<compile_context>
chip_gen: v7x
topology: tpu7x:2x2x1
jax: 0.10.0
libtpu: 0.0.40
codegen_flags: <defaults>
</compile_context>

<pallas_src>
import jax
import jax.numpy as jnp
from jax.experimental import pallas as pl
from jax.experimental.pallas import tpu as pltpu


_VMEM_LIMIT = 32 * 1024 * 1024  # explicit scoped-VMEM request, safe on v5e/v6e/v7x


def _proj_pool_kernel(x_ref, w_ref, b_ref, th_ref, g_ref, ph_ref):
    """Fused theta/g/phi projection + 2x2x2 max pool of g/phi.

    x_ref : (1, 8, tM, C)   bf16  window-major input tile
    w_ref : (C, 3*Ci)       bf16  [w_theta | w_g | w_phi]
    b_ref : (1, 3*Ci)       f32   [b_theta | b_g | b_phi]
    th_ref: (1, 8, tM, Ci)  bf16  full-resolution theta
    g_ref : (1, tM, Ci)     bf16  pooled g
    ph_ref: (1, tM, Ci)     bf16  pooled phi
    """
    ci = th_ref.shape[-1]
    w = w_ref[...]
    b = b_ref[...]
    gp_max = None
    for k in range(8):  # 8 voxels of each 2x2x2 pooling window (static unroll)
        pk = jnp.dot(x_ref[0, k], w, preferred_element_type=jnp.float32) + b
        th_ref[0, k] = pk[:, :ci].astype(th_ref.dtype)
        gp = pk[:, ci:]                       # [g | phi] for this window offset
        gp_max = gp if gp_max is None else jnp.maximum(gp_max, gp)
    g_ref[0] = gp_max[:, :ci].astype(g_ref.dtype)
    ph_ref[0] = gp_max[:, ci:].astype(ph_ref.dtype)


def _attn_kernel(th_ref, ph_ref, g_ref, x_ref, wW_ref, bn_ref, o_ref,
                 m_sc, l_sc, acc_sc):
    """Online-softmax attention + W conv + folded BN(eval) + residual.

    th_ref: (1, tN, Ci) bf16   ph_ref/g_ref: (1, tM, Ci) bf16
    x_ref : (1, tN, C)  f32    wW_ref: (Ci, C) bf16    bn_ref: (2, C) f32
    o_ref : (1, tN, C)  f32
    scratch: m_sc/l_sc (tN, 1) f32, acc_sc (tN, Ci) f32
    """
    km = pl.program_id(2)

    @pl.when(km == 0)
    def _():
        m_sc[...] = jnp.full_like(m_sc, -jnp.inf)
        l_sc[...] = jnp.zeros_like(l_sc)
        acc_sc[...] = jnp.zeros_like(acc_sc)

    th = th_ref[0]                                                    # (tN, Ci)
    ph = ph_ref[0]                                                    # (tM, Ci)
    g = g_ref[0]                                                      # (tM, Ci)

    # Scores: contract the channel (last) dims of both -> no explicit transpose.
    s = jax.lax.dot_general(th, ph, (((1,), (1,)), ((), ())),
                            preferred_element_type=jnp.float32)       # (tN, tM)

    m_prev = m_sc[...]
    m_new = jnp.maximum(m_prev, jnp.max(s, axis=-1, keepdims=True))
    alpha = jnp.exp(m_prev - m_new)
    p = jnp.exp(s - m_new)                                            # f32
    l_sc[...] = alpha * l_sc[...] + jnp.sum(p, axis=-1, keepdims=True)
    acc_sc[...] = alpha * acc_sc[...] + jnp.dot(
        p.astype(g.dtype), g, preferred_element_type=jnp.float32)
    m_sc[...] = m_new

    @pl.when(km == pl.num_programs(2) - 1)
    def _():
        y = acc_sc[...] * pl.reciprocal(l_sc[...], approx=True)       # (tN, Ci)
        wy = jnp.dot(y.astype(wW_ref.dtype), wW_ref[...],
                     preferred_element_type=jnp.float32)              # (tN, C)
        bn = bn_ref[...]
        o_ref[0] = wy * bn[0:1, :] + bn[1:2, :] + x_ref[0]


def nonlocal_block_forward(x, params, *, tile_m_proj=64, tile_n=256, tile_m=64):
    """x: (B, C, T, H, W) float32 -> (B, C, T, H, W) float32.  T/H/W must be even."""
    B, C, T, H, W = x.shape
    Ci = params['w_theta'].shape[1]
    T2, H2, W2 = T // 2, H // 2, W // 2
    M = T2 * H2 * W2
    N = T * H * W
    assert M % tile_m_proj == 0 and N % tile_n == 0 and M % tile_m == 0

    # Window-major permutation: row order n = k*M + m (k = 2x2x2 offset,
    # m = pooling-window index).  Attention is permutation invariant, so any
    # consistent position ordering is valid; this one makes the max pool a
    # running max over k inside kernel 1 and is inverted at the end.
    xp = x.reshape(B, C, T2, 2, H2, 2, W2, 2).transpose(0, 3, 5, 7, 2, 4, 6, 1)
    x_flat = xp.reshape(B, N, C)                        # f32, residual path
    x4 = x_flat.reshape(B, 8, M, C).astype(jnp.bfloat16)

    # Fused projection weights: one (C, 3*Ci) matmul instead of three.
    w_all = jnp.concatenate(
        [params['w_theta'], params['w_g'], params['w_phi']], axis=1
    ).astype(jnp.bfloat16)
    b_all = jnp.concatenate(
        [params['b_theta'], params['b_g'], params['b_phi']], axis=1
    ).astype(jnp.float32)
    w_W = params['w_W'].astype(jnp.bfloat16)
    bn_fold = params['bn_fold'].astype(jnp.float32)

    # ---- Kernel 1: fused theta/g/phi projections + 2x2x2 max pool ----
    theta4, g_p, phi_p = pl.pallas_call(
        _proj_pool_kernel,
        out_shape=(
            jax.ShapeDtypeStruct((B, 8, M, Ci), jnp.bfloat16),
            jax.ShapeDtypeStruct((B, M, Ci), jnp.bfloat16),
            jax.ShapeDtypeStruct((B, M, Ci), jnp.bfloat16),
        ),
        grid_spec=pltpu.PrefetchScalarGridSpec(
            num_scalar_prefetch=0,
            grid=(B, M // tile_m_proj),
            in_specs=[
                pl.BlockSpec((1, 8, tile_m_proj, C), lambda b, j: (b, 0, j, 0)),
                pl.BlockSpec((C, 3 * Ci), lambda b, j: (0, 0)),
                pl.BlockSpec((1, 3 * Ci), lambda b, j: (0, 0)),
            ],
            out_specs=(
                pl.BlockSpec((1, 8, tile_m_proj, Ci), lambda b, j: (b, 0, j, 0)),
                pl.BlockSpec((1, tile_m_proj, Ci), lambda b, j: (b, j, 0)),
                pl.BlockSpec((1, tile_m_proj, Ci), lambda b, j: (b, j, 0)),
            ),
        ),
        compiler_params=pltpu.CompilerParams(
            dimension_semantics=("parallel", "parallel"),
            vmem_limit_bytes=_VMEM_LIMIT),
    )(x4, w_all, b_all)

    theta_x = theta4.reshape(B, N, Ci)   # free metadata reshape, same row order

    # ---- Kernel 2: flash-style attention + W conv + BN(eval) + residual ----
    out = pl.pallas_call(
        _attn_kernel,
        out_shape=jax.ShapeDtypeStruct((B, N, C), jnp.float32),
        grid_spec=pltpu.PrefetchScalarGridSpec(
            num_scalar_prefetch=0,
            grid=(B, N // tile_n, M // tile_m),
            in_specs=[
                pl.BlockSpec((1, tile_n, Ci), lambda b, i, k: (b, i, 0)),
                pl.BlockSpec((1, tile_m, Ci), lambda b, i, k: (b, k, 0)),
                pl.BlockSpec((1, tile_m, Ci), lambda b, i, k: (b, k, 0)),
                pl.BlockSpec((1, tile_n, C), lambda b, i, k: (b, i, 0)),
                pl.BlockSpec((Ci, C), lambda b, i, k: (0, 0)),
                pl.BlockSpec((2, C), lambda b, i, k: (0, 0)),
            ],
            out_specs=pl.BlockSpec((1, tile_n, C), lambda b, i, k: (b, i, 0)),
            scratch_shapes=[
                pltpu.VMEM((tile_n, 1), jnp.float32),   # running max
                pltpu.VMEM((tile_n, 1), jnp.float32),   # running denom
                pltpu.VMEM((tile_n, Ci), jnp.float32),  # running numerator
            ],
        ),
        compiler_params=pltpu.CompilerParams(
            dimension_semantics=("parallel", "parallel", "arbitrary"),
            vmem_limit_bytes=_VMEM_LIMIT),
    )(theta_x, phi_p, g_p, x_flat, w_W, bn_fold)

    # Undo the window-major permutation.
    out6 = out.reshape(B, 2, 2, 2, T2, H2, W2, C)
    return out6.transpose(0, 7, 4, 1, 5, 2, 6, 3).reshape(B, C, T, H, W)


def _reference_forward(x, params):
    """Pure-JAX (f32) reference mirroring the PyTorch _embedded_gaussian path."""
    B, C, T, H, W = x.shape
    Ci = params['w_theta'].shape[1]
    N = T * H * W
    xf = jnp.transpose(x, (0, 2, 3, 4, 1)).reshape(B, N, C)
    g = xf @ params['w_g'] + params['b_g']
    th = xf @ params['w_theta'] + params['b_theta']
    ph = xf @ params['w_phi'] + params['b_phi']

    def pool(a):
        a = a.reshape(B, T // 2, 2, H // 2, 2, W // 2, 2, Ci)
        return a.max(axis=(2, 4, 6)).reshape(B, -1, Ci)

    g, ph = pool(g), pool(ph)
    f = jax.nn.softmax(jnp.einsum('bnc,bmc->bnm', th, ph), axis=-1)
    y = jnp.einsum('bnm,bmc->bnc', f, g)
    wy = y @ params['w_W']
    z = wy * params['bn_fold'][0] + params['bn_fold'][1] + xf
    return z.reshape(B, T, H, W, C).transpose(0, 4, 1, 2, 3)


if __name__ == "__main__":
    B, C, T, H, W = 2, 16, 4, 16, 16        # (b, c, t, h, w); N=1024, pooled M=128
    Ci = C // 2                              # inter_channels = in_channels // 2
    key = jax.random.PRNGKey(0)
    ks = list(jax.random.split(key, 12))

    def init(k, shape, s=0.1):
        return (jax.random.normal(k, shape, jnp.float32) * s).astype(jnp.float32)

    x = jax.random.normal(ks[0], (B, C, T, H, W), jnp.float32)

    params = dict(
        w_g=init(ks[1], (C, Ci)),     b_g=init(ks[2], (1, Ci)),
        w_theta=init(ks[3], (C, Ci)), b_theta=init(ks[4], (1, Ci)),
        w_phi=init(ks[5], (C, Ci)),   b_phi=init(ks[6], (1, Ci)),
        w_W=init(ks[7], (Ci, C)),
    )

    # Eval-mode BatchNorm3d folded into a per-channel affine (scale, shift).
    # NOTE: the PyTorch __init__ zero-inits BN gamma/beta (so W_y == 0 and z == x);
    # nonzero deterministic values are used here so the kernel path is exercised.
    b_W = init(ks[8], (C,))
    gamma = 1.0 + init(ks[9], (C,))
    beta = init(ks[10], (C,))
    running_mean = jnp.zeros((C,), jnp.float32)
    running_var = jnp.ones((C,), jnp.float32)
    eps = 1e-5
    scale = gamma / jnp.sqrt(running_var + eps)
    shift = beta + scale * (b_W - running_mean)
    params['bn_fold'] = jnp.stack([scale, shift], axis=0)   # (2, C)
    # TODO(synk): training-mode BatchNorm (batch statistics) is not implemented;
    # eval-mode (running stats) semantics are used.
    # TODO(synk): only the default embedded_gaussian / dimension=3 / sub_sample /
    # bn_layer / group_size=None path of the module is implemented.

    z = jax.block_until_ready(nonlocal_block_forward(x, params))
    assert z.shape == (B, C, T, H, W) and z.dtype == jnp.float32

    z_ref = _reference_forward(x, params)
    # bf16 MXU operands + approx reciprocal -> loosened tolerance vs f32 reference.
    assert jnp.allclose(z, z_ref, atol=2e-2, rtol=2e-2), float(
        jnp.max(jnp.abs(z - z_ref)))

    print("KERNEL_OK")
</pallas_src>

<mosaic_0001>
module attributes {stable_mosaic.version = 11 : i64} {
  func.func @_proj_pool_kernel(%arg0: i32, %arg1: i32, %arg2: memref<1x8x64x16xbf16, #tpu.memory_space<vmem>>, %arg3: memref<16x24xbf16, #tpu.memory_space<vmem>>, %arg4: memref<1x24xf32, #tpu.memory_space<vmem>>, %arg5: memref<1x8x64x8xbf16, #tpu.memory_space<vmem>>, %arg6: memref<1x64x8xbf16, #tpu.memory_space<vmem>>, %arg7: memref<1x64x8xbf16, #tpu.memory_space<vmem>>) attributes {dimension_semantics = [#tpu.dimension_semantics<parallel>, #tpu.dimension_semantics<parallel>], iteration_bounds = array<i64: 2, 2>, scalar_prefetch = 0 : i64, scratch_operands = 0 : i64, tpu.core_type = #tpu.core_type<tc>, window_params = [{transform_indices = @transform_0, window_bounds = array<i64: 1, 8, 64, 16>}, {pipeline_mode = #tpu.pipeline_mode<synchronous>, transform_indices = @transform_1, window_bounds = array<i64: 16, 24>}, {pipeline_mode = #tpu.pipeline_mode<synchronous>, transform_indices = @transform_2, window_bounds = array<i64: 1, 24>}, {transform_indices = @transform_3, window_bounds = array<i64: 1, 8, 64, 8>}, {transform_indices = @transform_4, window_bounds = array<i64: 1, 64, 8>}, {transform_indices = @transform_5, window_bounds = array<i64: 1, 64, 8>}]} {
    %c0 = arith.constant 0 : index
    %c0_0 = arith.constant 0 : index
    %0 = vector.load %arg3[%c0, %c0_0] : memref<16x24xbf16, #tpu.memory_space<vmem>>, vector<16x24xbf16>
    %c0_1 = arith.constant 0 : index
    %c0_2 = arith.constant 0 : index
    %1 = vector.load %arg4[%c0_1, %c0_2] : memref<1x24xf32, #tpu.memory_space<vmem>>, vector<1x24xf32>
    %c0_3 = arith.constant 0 : index
    %c0_4 = arith.constant 0 : index
    %c0_5 = arith.constant 0 : index
    %c0_6 = arith.constant 0 : index
    %2 = vector.load %arg2[%c0_3, %c0_4, %c0_5, %c0_6] : memref<1x8x64x16xbf16, #tpu.memory_space<vmem>>, vector<1x1x64x16xbf16>
    %3 = vector.shape_cast %2 : vector<1x1x64x16xbf16> to vector<64x16xbf16>
    %cst = arith.constant dense<0.000000e+00> : vector<64x24xf32>
    %4 = tpu.matmul %3, %0, %cst {dimension_numbers = #tpu.dot_dimension_numbers<[1], [0], [0], [1], [0, 0, 1, 1], [], []>} : vector<64x16xbf16>, vector<16x24xbf16>, vector<64x24xf32> -> vector<64x24xf32>
    %5 = vector.broadcast %1 : vector<1x24xf32> to vector<64x24xf32>
    %6 = arith.addf %4, %5 : vector<64x24xf32>
    %7 = vector.extract_strided_slice %6 {offsets = [0, 0], sizes = [64, 8], strides = [1, 1]} : vector<64x24xf32> to vector<64x8xf32>
    %8 = arith.truncf %7 : vector<64x8xf32> to vector<64x8xbf16>
    %c0_7 = arith.constant 0 : index
    %c0_8 = arith.constant 0 : index
    %c0_9 = arith.constant 0 : index
    %c0_10 = arith.constant 0 : index
    %9 = vector.load %arg5[%c0_7, %c0_8, %c0_9, %c0_10] : memref<1x8x64x8xbf16, #tpu.memory_space<vmem>>, vector<1x1x64x8xbf16>
    %10 = vector.shape_cast %9 : vector<1x1x64x8xbf16> to vector<64x8xbf16>
    %11 = vector.shape_cast %8 : vector<64x8xbf16> to vector<1x1x64x8xbf16>
    tpu.vector_store %arg5[%c0_7, %c0_8, %c0_9, %c0_10], %11 {strides = array<i32>} : memref<1x8x64x8xbf16, #tpu.memory_space<vmem>>, vector<1x1x64x8xbf16>,
    %12 = vector.extract_strided_slice %6 {offsets = [0, 8], sizes = [64, 16], strides = [1, 1]} : vector<64x24xf32> to vector<64x16xf32>
    %c0_11 = arith.constant 0 : index
    %c1 = arith.constant 1 : index
    %c0_12 = arith.constant 0 : index
    %c0_13 = arith.constant 0 : index
    %13 = vector.load %arg2[%c0_11, %c1, %c0_12, %c0_13] : memref<1x8x64x16xbf16, #tpu.memory_space<vmem>>, vector<1x1x64x16xbf16>
    %14 = vector.shape_cast %13 : vector<1x1x64x16xbf16> to vector<64x16xbf16>
    %cst_14 = arith.constant dense<0.000000e+00> : vector<64x24xf32>
    %15 = tpu.matmul %14, %0, %cst_14 {dimension_numbers = #tpu.dot_dimension_numbers<[1], [0], [0], [1], [0, 0, 1, 1], [], []>} : vector<64x16xbf16>, vector<16x24xbf16>, vector<64x24xf32> -> vector<64x24xf32>
    %16 = vector.broadcast %1 : vector<1x24xf32> to vector<64x24xf32>
    %17 = arith.addf %15, %16 : vector<64x24xf32>
    %18 = vector.extract_strided_slice %17 {offsets = [0, 0], sizes = [64, 8], strides = [1, 1]} : vector<64x24xf32> to vector<64x8xf32>
    %19 = arith.truncf %18 : vector<64x8xf32> to vector<64x8xbf16>
    %c0_15 = arith.constant 0 : index
    %c1_16 = arith.constant 1 : index
    %c0_17 = arith.constant 0 : index
    %c0_18 = arith.constant 0 : index
    %20 = vector.load %arg5[%c0_15, %c1_16, %c0_17, %c0_18] : memref<1x8x64x8xbf16, #tpu.memory_space<vmem>>, vector<1x1x64x8xbf16>
    %21 = vector.shape_cast %20 : vector<1x1x64x8xbf16> to vector<64x8xbf16>
    %22 = vector.shape_cast %19 : vector<64x8xbf16> to vector<1x1x64x8xbf16>
    tpu.vector_store %arg5[%c0_15, %c1_16, %c0_17, %c0_18], %22 {strides = array<i32>} : memref<1x8x64x8xbf16, #tpu.memory_space<vmem>>, vector<1x1x64x8xbf16>,
    %23 = vector.extract_strided_slice %17 {offsets = [0, 8], sizes = [64, 16], strides = [1, 1]} : vector<64x24xf32> to vector<64x16xf32>
    %24 = arith.maximumf %12, %23 : vector<64x16xf32>
    %c0_19 = arith.constant 0 : index
    %c2 = arith.constant 2 : index
    %c0_20 = arith.constant 0 : index
    %c0_21 = arith.constant 0 : index
    %25 = vector.load %arg2[%c0_19, %c2, %c0_20, %c0_21] : memref<1x8x64x16xbf16, #tpu.memory_space<vmem>>, vector<1x1x64x16xbf16>
    %26 = vector.shape_cast %25 : vector<1x1x64x16xbf16> to vector<64x16xbf16>
    %cst_22 = arith.constant dense<0.000000e+00> : vector<64x24xf32>
    %27 = tpu.matmul %26, %0, %cst_22 {dimension_numbers = #tpu.dot_dimension_numbers<[1], [0], [0], [1], [0, 0, 1, 1], [], []>} : vector<64x16xbf16>, vector<16x24xbf16>, vector<64x24xf32> -> vector<64x24xf32>
    %28 = vector.broadcast %1 : vector<1x24xf32> to vector<64x24xf32>
    %29 = arith.addf %27, %28 : vector<64x24xf32>
    %30 = vector.extract_strided_slice %29 {offsets = [0, 0], sizes = [64, 8], strides = [1, 1]} : vector<64x24xf32> to vector<64x8xf32>
    %31 = arith.truncf %30 : vector<64x8xf32> to vector<64x8xbf16>
    %c0_23 = arith.constant 0 : index
    %c2_24 = arith.constant 2 : index
    %c0_25 = arith.constant 0 : index
    %c0_26 = arith.constant 0 : index
    %32 = vector.load %arg5[%c0_23, %c2_24, %c0_25, %c0_26] : memref<1x8x64x8xbf16, #tpu.memory_space<vmem>>, vector<1x1x64x8xbf16>
    %33 = vector.shape_cast %32 : vector<1x1x64x8xbf16> to vector<64x8xbf16>
    %34 = vector.shape_cast %31 : vector<64x8xbf16> to vector<1x1x64x8xbf16>
    tpu.vector_store %arg5[%c0_23, %c2_24, %c0_25, %c0_26], %34 {strides = array<i32>} : memref<1x8x64x8xbf16, #tpu.memory_space<vmem>>, vector<1x1x64x8xbf16>,
    %35 = vector.extract_strided_slice %29 {offsets = [0, 8], sizes = [64, 16], strides = [1, 1]} : vector<64x24xf32> to vector<64x16xf32>
    %36 = arith.maximumf %24, %35 : vector<64x16xf32>
    %c0_27 = arith.constant 0 : index
    %c3 = arith.constant 3 : index
    %c0_28 = arith.constant 0 : index
    %c0_29 = arith.constant 0 : index
    %37 = vector.load %arg2[%c0_27, %c3, %c0_28, %c0_29] : memref<1x8x64x16xbf16, #tpu.memory_space<vmem>>, vector<1x1x64x16xbf16>
    %38 = vector.shape_cast %37 : vector<1x1x64x16xbf16> to vector<64x16xbf16>
    %cst_30 = arith.constant dense<0.000000e+00> : vector<64x24xf32>
    %39 = tpu.matmul %38, %0, %cst_30 {dimension_numbers = #tpu.dot_dimension_numbers<[1], [0], [0], [1], [0, 0, 1, 1], [], []>} : vector<64x16xbf16>, vector<16x24xbf16>, vector<64x24xf32> -> vector<64x24xf32>
    %40 = vector.broadcast %1 : vector<1x24xf32> to vector<64x24xf32>
    %41 = arith.addf %39, %40 : vector<64x24xf32>
    %42 = vector.extract_strided_slice %41 {offsets = [0, 0], sizes = [64, 8], strides = [1, 1]} : vector<64x24xf32> to vector<64x8xf32>
    %43 = arith.truncf %42 : vector<64x8xf32> to vector<64x8xbf16>
    %c0_31 = arith.constant 0 : index
    %c3_32 = arith.constant 3 : index
    %c0_33 = arith.constant 0 : index
    %c0_34 = arith.constant 0 : index
    %44 = vector.load %arg5[%c0_31, %c3_32, %c0_33, %c0_34] : memref<1x8x64x8xbf16, #tpu.memory_space<vmem>>, vector<1x1x64x8xbf16>
    %45 = vector.shape_cast %44 : vector<1x1x64x8xbf16> to vector<64x8xbf16>
    %46 = vector.shape_cast %43 : vector<64x8xbf16> to vector<1x1x64x8xbf16>
    tpu.vector_store %arg5[%c0_31, %c3_32, %c0_33, %c0_34], %46 {strides = array<i32>} : memref<1x8x64x8xbf16, #tpu.memory_space<vmem>>, vector<1x1x64x8xbf16>,
    %47 = vector.extract_strided_slice %41 {offsets = [0, 8], sizes = [64, 16], strides = [1, 1]} : vector<64x24xf32> to vector<64x16xf32>
    %48 = arith.maximumf %36, %47 : vector<64x16xf32>
    %c0_35 = arith.constant 0 : index
    %c4 = arith.constant 4 : index
    %c0_36 = arith.constant 0 : index
    %c0_37 = arith.constant 0 : index
    %49 = vector.load %arg2[%c0_35, %c4, %c0_36, %c0_37] : memref<1x8x64x16xbf16, #tpu.memory_space<vmem>>, vector<1x1x64x16xbf16>
    %50 = vector.shape_cast %49 : vector<1x1x64x16xbf16> to vector<64x16xbf16>
    %cst_38 = arith.constant dense<0.000000e+00> : vector<64x24xf32>
    %51 = tpu.matmul %50, %0, %cst_38 {dimension_numbers = #tpu.dot_dimension_numbers<[1], [0], [0], [1], [0, 0, 1, 1], [], []>} : vector<64x16xbf16>, vector<16x24xbf16>, vector<64x24xf32> -> vector<64x24xf32>
    %52 = vector.broadcast %1 : vector<1x24xf32> to vector<64x24xf32>
    %53 = arith.addf %51, %52 : vector<64x24xf32>
    %54 = vector.extract_strided_slice %53 {offsets = [0, 0], sizes = [64, 8], strides = [1, 1]} : vector<64x24xf32> to vector<64x8xf32>
    %55 = arith.truncf %54 : vector<64x8xf32> to vector<64x8xbf16>
    %c0_39 = arith.constant 0 : index
    %c4_40 = arith.constant 4 : index
    %c0_41 = arith.constant 0 : index
    %c0_42 = arith.constant 0 : index
    %56 = vector.load %arg5[%c0_39, %c4_40, %c0_41, %c0_42] : memref<1x8x64x8xbf16, #tpu.memory_space<vmem>>, vector<1x1x64x8xbf16>
    %57 = vector.shape_cast %56 : vector<1x1x64x8xbf16> to vector<64x8xbf16>
    %58 = vector.shape_cast %55 : vector<64x8xbf16> to vector<1x1x64x8xbf16>
    tpu.vector_store %arg5[%c0_39, %c4_40, %c0_41, %c0_42], %58 {strides = array<i32>} : memref<1x8x64x8xbf16, #tpu.memory_space<vmem>>, vector<1x1x64x8xbf16>,
    %59 = vector.extract_strided_slice %53 {offsets = [0, 8], sizes = [64, 16], strides = [1, 1]} : vector<64x24xf32> to vector<64x16xf32>
    %60 = arith.maximumf %48, %59 : vector<64x16xf32>
    %c0_43 = arith.constant 0 : index
    %c5 = arith.constant 5 : index
    %c0_44 = arith.constant 0 : index
    %c0_45 = arith.constant 0 : index
    %61 = vector.load %arg2[%c0_43, %c5, %c0_44, %c0_45] : memref<1x8x64x16xbf16, #tpu.memory_space<vmem>>, vector<1x1x64x16xbf16>
    %62 = vector.shape_cast %61 : vector<1x1x64x16xbf16> to vector<64x16xbf16>
    %cst_46 = arith.constant dense<0.000000e+00> : vector<64x24xf32>
    %63 = tpu.matmul %62, %0, %cst_46 {dimension_numbers = #tpu.dot_dimension_numbers<[1], [0], [0], [1], [0, 0, 1, 1], [], []>} : vector<64x16xbf16>, vector<16x24xbf16>, vector<64x24xf32> -> vector<64x24xf32>
    %64 = vector.broadcast %1 : vector<1x24xf32> to vector<64x24xf32>
    %65 = arith.addf %63, %64 : vector<64x24xf32>
    %66 = vector.extract_strided_slice %65 {offsets = [0, 0], sizes = [64, 8], strides = [1, 1]} : vector<64x24xf32> to vector<64x8xf32>
    %67 = arith.truncf %66 : vector<64x8xf32> to vector<64x8xbf16>
    %c0_47 = arith.constant 0 : index
    %c5_48 = arith.constant 5 : index
    %c0_49 = arith.constant 0 : index
    %c0_50 = arith.constant 0 : index
    %68 = vector.load %arg5[%c0_47, %c5_48, %c0_49, %c0_50] : memref<1x8x64x8xbf16, #tpu.memory_space<vmem>>, vector<1x1x64x8xbf16>
    %69 = vector.shape_cast %68 : vector<1x1x64x8xbf16> to vector<64x8xbf16>
    %70 = vector.shape_cast %67 : vector<64x8xbf16> to vector<1x1x64x8xbf16>
    tpu.vector_store %arg5[%c0_47, %c5_48, %c0_49, %c0_50], %70 {strides = array<i32>} : memref<1x8x64x8xbf16, #tpu.memory_space<vmem>>, vector<1x1x64x8xbf16>,
    %71 = vector.extract_strided_slice %65 {offsets = [0, 8], sizes = [64, 16], strides = [1, 1]} : vector<64x24xf32> to vector<64x16xf32>
    %72 = arith.maximumf %60, %71 : vector<64x16xf32>
    %c0_51 = arith.constant 0 : index
    %c6 = arith.constant 6 : index
    %c0_52 = arith.constant 0 : index
    %c0_53 = arith.constant 0 : index
    %73 = vector.load %arg2[%c0_51, %c6, %c0_52, %c0_53] : memref<1x8x64x16xbf16, #tpu.memory_space<vmem>>, vector<1x1x64x16xbf16>
    %74 = vector.shape_cast %73 : vector<1x1x64x16xbf16> to vector<64x16xbf16>
    %cst_54 = arith.constant dense<0.000000e+00> : vector<64x24xf32>
    %75 = tpu.matmul %74, %0, %cst_54 {dimension_numbers = #tpu.dot_dimension_numbers<[1], [0], [0], [1], [0, 0, 1, 1], [], []>} : vector<64x16xbf16>, vector<16x24xbf16>, vector<64x24xf32> -> vector<64x24xf32>
    %76 = vector.broadcast %1 : vector<1x24xf32> to vector<64x24xf32>
    %77 = arith.addf %75, %76 : vector<64x24xf32>
    %78 = vector.extract_strided_slice %77 {offsets = [0, 0], sizes = [64, 8], strides = [1, 1]} : vector<64x24xf32> to vector<64x8xf32>
    %79 = arith.truncf %78 : vector<64x8xf32> to vector<64x8xbf16>
    %c0_55 = arith.constant 0 : index
    %c6_56 = arith.constant 6 : index
    %c0_57 = arith.constant 0 : index
    %c0_58 = arith.constant 0 : index
    %80 = vector.load %arg5[%c0_55, %c6_56, %c0_57, %c0_58] : memref<1x8x64x8xbf16, #tpu.memory_space<vmem>>, vector<1x1x64x8xbf16>
    %81 = vector.shape_cast %80 : vector<1x1x64x8xbf16> to vector<64x8xbf16>
    %82 = vector.shape_cast %79 : vector<64x8xbf16> to vector<1x1x64x8xbf16>
    tpu.vector_store %arg5[%c0_55, %c6_56, %c0_57, %c0_58], %82 {strides = array<i32>} : memref<1x8x64x8xbf16, #tpu.memory_space<vmem>>, vector<1x1x64x8xbf16>,
    %83 = vector.extract_strided_slice %77 {offsets = [0, 8], sizes = [64, 16], strides = [1, 1]} : vector<64x24xf32> to vector<64x16xf32>
    %84 = arith.maximumf %72, %83 : vector<64x16xf32>
    %c0_59 = arith.constant 0 : index
    %c7 = arith.constant 7 : index
    %c0_60 = arith.constant 0 : index
    %c0_61 = arith.constant 0 : index
    %85 = vector.load %arg2[%c0_59, %c7, %c0_60, %c0_61] : memref<1x8x64x16xbf16, #tpu.memory_space<vmem>>, vector<1x1x64x16xbf16>
    %86 = vector.shape_cast %85 : vector<1x1x64x16xbf16> to vector<64x16xbf16>
    %cst_62 = arith.constant dense<0.000000e+00> : vector<64x24xf32>
    %87 = tpu.matmul %86, %0, %cst_62 {dimension_numbers = #tpu.dot_dimension_numbers<[1], [0], [0], [1], [0, 0, 1, 1], [], []>} : vector<64x16xbf16>, vector<16x24xbf16>, vector<64x24xf32> -> vector<64x24xf32>
    %88 = vector.broadcast %1 : vector<1x24xf32> to vector<64x24xf32>
    %89 = arith.addf %87, %88 : vector<64x24xf32>
    %90 = vector.extract_strided_slice %89 {offsets = [0, 0], sizes = [64, 8], strides = [1, 1]} : vector<64x24xf32> to vector<64x8xf32>
    %91 = arith.truncf %90 : vector<64x8xf32> to vector<64x8xbf16>
    %c0_63 = arith.constant 0 : index
    %c7_64 = arith.constant 7 : index
    %c0_65 = arith.constant 0 : index
    %c0_66 = arith.constant 0 : index
    %92 = vector.load %arg5[%c0_63, %c7_64, %c0_65, %c0_66] : memref<1x8x64x8xbf16, #tpu.memory_space<vmem>>, vector<1x1x64x8xbf16>
    %93 = vector.shape_cast %92 : vector<1x1x64x8xbf16> to vector<64x8xbf16>
    %94 = vector.shape_cast %91 : vector<64x8xbf16> to vector<1x1x64x8xbf16>
    tpu.vector_store %arg5[%c0_63, %c7_64, %c0_65, %c0_66], %94 {strides = array<i32>} : memref<1x8x64x8xbf16, #tpu.memory_space<vmem>>, vector<1x1x64x8xbf16>,
    %95 = vector.extract_strided_slice %89 {offsets = [0, 8], sizes = [64, 16], strides = [1, 1]} : vector<64x24xf32> to vector<64x16xf32>
    %96 = arith.maximumf %84, %95 : vector<64x16xf32>
    %97 = vector.extract_strided_slice %96 {offsets = [0, 0], sizes = [64, 8], strides = [1, 1]} : vector<64x16xf32> to vector<64x8xf32>
    %98 = arith.truncf %97 : vector<64x8xf32> to vector<64x8xbf16>
    %c0_67 = arith.constant 0 : index
    %c0_68 = arith.constant 0 : index
    %c0_69 = arith.constant 0 : index
    %99 = vector.load %arg6[%c0_67, %c0_68, %c0_69] : memref<1x64x8xbf16, #tpu.memory_space<vmem>>, vector<1x64x8xbf16>
    %100 = vector.shape_cast %99 : vector<1x64x8xbf16> to vector<64x8xbf16>
    %101 = vector.shape_cast %98 : vector<64x8xbf16> to vector<1x64x8xbf16>
    tpu.vector_store %arg6[%c0_67, %c0_68, %c0_69], %101 {strides = array<i32>} : memref<1x64x8xbf16, #tpu.memory_space<vmem>>, vector<1x64x8xbf16>,
    %102 = vector.extract_strided_slice %96 {offsets = [0, 8], sizes = [64, 8], strides = [1, 1]} : vector<64x16xf32> to vector<64x8xf32>
    %103 = arith.truncf %102 : vector<64x8xf32> to vector<64x8xbf16>
    %c0_70 = arith.constant 0 : index
    %c0_71 = arith.constant 0 : index
    %c0_72 = arith.constant 0 : index
    %104 = vector.load %arg7[%c0_70, %c0_71, %c0_72] : memref<1x64x8xbf16, #tpu.memory_space<vmem>>, vector<1x64x8xbf16>
    %105 = vector.shape_cast %104 : vector<1x64x8xbf16> to vector<64x8xbf16>
    %106 = vector.shape_cast %103 : vector<64x8xbf16> to vector<1x64x8xbf16>
    tpu.vector_store %arg7[%c0_70, %c0_71, %c0_72], %106 {strides = array<i32>} : memref<1x64x8xbf16, #tpu.memory_space<vmem>>, vector<1x64x8xbf16>,
    return
  }
  func.func @transform_0(%arg0: i32, %arg1: i32) -> (i32, i32, i32, i32) {
    %c0_i32 = arith.constant 0 : i32
    %c0_i32_0 = arith.constant 0 : i32
    %c0_i32_1 = arith.constant 0 : i32
    return %arg0, %c0_i32, %arg1, %c0_i32_0 : i32, i32, i32, i32
  }
  func.func @transform_1(%arg0: i32, %arg1: i32) -> (i32, i32) {
    %c0_i32 = arith.constant 0 : i32
    %c0_i32_0 = arith.constant 0 : i32
    %c0_i32_1 = arith.constant 0 : i32
    return %c0_i32, %c0_i32_0 : i32, i32
  }
  func.func @transform_2(%arg0: i32, %arg1: i32) -> (i32, i32) {
    %c0_i32 = arith.constant 0 : i32
    %c0_i32_0 = arith.constant 0 : i32
    %c0_i32_1 = arith.constant 0 : i32
    return %c0_i32, %c0_i32_0 : i32, i32
  }
  func.func @transform_3(%arg0: i32, %arg1: i32) -> (i32, i32, i32, i32) {
    %c0_i32 = arith.constant 0 : i32
    %c0_i32_0 = arith.constant 0 : i32
    %c0_i32_1 = arith.constant 0 : i32
    return %arg0, %c0_i32, %arg1, %c0_i32_0 : i32, i32, i32, i32
  }
  func.func @transform_4(%arg0: i32, %arg1: i32) -> (i32, i32, i32) {
    %c0_i32 = arith.constant 0 : i32
    %c0_i32_0 = arith.constant 0 : i32
    return %arg0, %arg1, %c0_i32 : i32, i32, i32
  }
  func.func @transform_5(%arg0: i32, %arg1: i32) -> (i32, i32, i32) {
    %c0_i32 = arith.constant 0 : i32
    %c0_i32_0 = arith.constant 0 : i32
    return %arg0, %arg1, %c0_i32 : i32, i32, i32
  }
}

</mosaic_0001>

<bundles_post_ra>
// kernel: tpu_custom_call.1
= control target key start
LH: loop header
LB: loop body
LE: loop exit
PB: predicated region body
PF: predicated region fallthrough
CT: control target
= control target key end

     0   :  { %s3037_s18 = smov 0   ;;  %s3039_s19 = smov 0   ;;  %s3874_s0 = inlined_call_operand.vmem [shape: bf16[2,8,128,16], index: 0, kind: input, shape index: {}]   ;;  %s3875_s1 = inlined_call_operand.vmem [shape: bf16[16,24], index: 1, kind: input, shape index: {}]   ;;  %s3876_s2 = inlined_call_operand.vmem [shape: f32[1,24], index: 2, kind: input, shape index: {}]   ;;  %s3877_s3 = inlined_call_operand.vmem [shape: bf16[2,8,128,8], index: 3, kind: output, shape index: {0}]   ;;  %s3878_s4 = inlined_call_operand.vmem [shape: bf16[2,128,8], index: 4, kind: output, shape index: {1}]   ;;  %s3879_s5 = inlined_call_operand.vmem [shape: bf16[2,128,8], index: 5, kind: output, shape index: {2}]  }
   0x1   :  { %s3041_s20 = smov 0   ;;  %s3043_s21 = smov 0  }
   0x2   :  { %s3045_s22 = smov 0   ;;  %s3047_s23 = smov 0  }
   0x3   :  { %s3049_s24 = smov 0  }
   0x4 LB: > { %s25_s25 = sadd.s32 1, %s2995_s22  ;;  %s28_s26 = sadd.s32 1, %s2999_s23  ;;  %s3003_s24 = sphi %s3049_s24, %s16_s24   ;;  %s2999_s23 = sphi %s3047_s23, %s3886_s23   ;;  %s2995_s22 = sphi %s3045_s22, %s3885_s22   ;;  %s2991_s21 = sphi %s3043_s21, %s3884_s21   ;;  %s2987_s20 = sphi %s3041_s20, %s3883_s20   ;;  %s2983_s19 = sphi %s3039_s19, %s3882_s19   ;;  %s2979_s18 = sphi %s3037_s18, %s3881_s18  }
   0x5   : > { %p26_p0 = scmp.ge.s32.totalorder %s25_s25, 2  ;;  %s2393_s27 = sadd.s32 4294967295, %s3003_s24  }
   0x6   : > { %p44_p1 = scmp.ne.s32.totalorder %s2983_s19, %s2979_s18  ;;  %p45_p2 = scmp.eq.s32.totalorder %s3003_s24, 0 }
   0x7   : > { %s3888_s25 = smov (%p26_p0, %s25_s25), 0  ;;  %s3890_s26 = smov (!%p26_p0, %s28_s26), %s2999_s23 }
   0x8   : > { %p30_p3 = scmp.ge.s32.totalorder %s3890_s26, 2  ;;  %p118_p4 = scmp.eq.s32.totalorder %s2393_s27, 3 }
   0x9   : > { %s33_s28 = ssub.s32 %s2995_s22, %s3888_s25  ;;  %p46_p5 = por %p45_p2, %p44_p1 }
   0xa   : > { %s3892_s26 = smov (%p30_p3, %s3890_s26), 0  ;;  %p3085_p6 = por %p118_p4, %p44_p1 }
   0xb   : > { %s32_s30 = ssub.s32 %s2999_s23, %s3892_s26  ;;  %s37_s7 = sadd.s32 1, %s2983_s19 }
   0xc   : > { %s34_s6 = sor.u32 %s33_s28, %s32_s30  ;;  %p2396_p8 = scmp.ge.s32.totalorder %s3003_s24, 4 }
   0xd   : > { %p35_p7 = scmp.eq.s32.totalorder %s34_s6, 0 }
   0xe   : > { %202 = sbr.rel (%p2396_p8) target bundleno = 44 (0x2c), region = 24 }
   0xf   : > { %s3093_s8 = scalar_select %p35_p7, %s2983_s19, %s37_s7  }
  0x15   : > { %205 = sbr.rel (!%p46_p5) target bundleno = 44 (0x2c), region = 28  ;;  %s207_s9 = sand.u32 (%p46_p5), 1, %s2983_s19  }
  0x16   : > { %s2398_s10 = sshll.u32 (%p46_p5), %s2995_s22, 3  ;;  %s2397_s11 = sshll.u32 (%p46_p5), %s207_s9, 8 }
  0x17   : > { %s2399_s12 = sshll.u32 (%p46_p5), %s2999_s23, 7  ;;  %s3107_s27 = scalar_lea.vmem (%p46_p5), [#allocation2], %s2397_s11 }
  0x18   : > { %s212_s13 = sadd.s32 (%p46_p5), %s2399_s12, %s2398_s10 }
  0x19   : > { %s2400_s14 = sshll.u32 (%p46_p5), %s212_s13, 2 }
  0x1a   : > { %s3102_s17 = scalar_lea.vmem (%p46_p5), %s3874_s0, %s2400_s14 }
  0x1b   : > { %v230_v0 = vld [vmem:[%s3102_s17] sm:$0xff] (%p46_p5)   ;;  %v234_v1 = vld [vmem:[%s3102_s17 + $0x8] sm:$0xff] (%p46_p5)   ;;  %v238_v2 = vld [vmem:[%s3102_s17 + $0x10] sm:$0xff] (%p46_p5)  }
  0x1c   : > { %231 = vst [vmem:[%s3107_s27] sm:$0xff] %v230_v0   ;;  %235 = vst [vmem:[%s3107_s27 + $0x8] sm:$0xff] %v234_v1   ;;  %v242_v3 = vld [vmem:[%s3102_s17 + $0x18] sm:$0xff]   ;;  %v246_v4 = vld [vmem:[%s3102_s17 + $0x40] sm:$0xff]  }
  0x1d   : > { %239 = vst [vmem:[%s3107_s27 + $0x10] sm:$0xff] %v238_v2   ;;  %v250_v5 = vld [vmem:[%s3102_s17 + $0x48] sm:$0xff]   ;;  %243 = vst [vmem:[%s3107_s27 + $0x18] sm:$0xff] %v242_v3   ;;  %v254_v6 = vld [vmem:[%s3102_s17 + $0x50] sm:$0xff]  }
  0x1e   : > { %247 = vst [vmem:[%s3107_s27 + $0x20] sm:$0xff] %v246_v4   ;;  %251 = vst [vmem:[%s3107_s27 + $0x28] sm:$0xff] %v250_v5   ;;  %v258_v7 = vld [vmem:[%s3102_s17 + $0x58] sm:$0xff]   ;;  %v262_v8 = vld [vmem:[%s3102_s17 + $0x80] sm:$0xff]  }
  0x1f   : > { %255 = vst [vmem:[%s3107_s27 + $0x30] sm:$0xff] %v254_v6   ;;  %259 = vst [vmem:[%s3107_s27 + $0x38] sm:$0xff] %v258_v7   ;;  %v266_v9 = vld [vmem:[%s3102_s17 + $0x88] sm:$0xff]   ;;  %v270_v10 = vld [vmem:[%s3102_s17 + $0x90] sm:$0xff]  }
  0x20   : > { %263 = vst [vmem:[%s3107_s27 + $0x40] sm:$0xff] %v262_v8   ;;  %v274_v11 = vld [vmem:[%s3102_s17 + $0x98] sm:$0xff]   ;;  %267 = vst [vmem:[%s3107_s27 + $0x48] sm:$0xff] %v266_v9   ;;  %v278_v12 = vld [vmem:[%s3102_s17 + $0xc0] sm:$0xff]  }
  0x21   : > { %271 = vst [vmem:[%s3107_s27 + $0x50] sm:$0xff] %v270_v10   ;;  %275 = vst [vmem:[%s3107_s27 + $0x58] sm:$0xff] %v274_v11   ;;  %v282_v13 = vld [vmem:[%s3102_s17 + $0xc8] sm:$0xff]   ;;  %v286_v14 = vld [vmem:[%s3102_s17 + $0xd0] sm:$0xff]  }
  0x22   : > { %279 = vst [vmem:[%s3107_s27 + $0x60] sm:$0xff] %v278_v12   ;;  %283 = vst [vmem:[%s3107_s27 + $0x68] sm:$0xff] %v282_v13   ;;  %v290_v15 = vld [vmem:[%s3102_s17 + $0xd8] sm:$0xff]   ;;  %v294_v16 = vld [vmem:[%s3102_s17 + $0x100] sm:$0xff]  }
  0x23   : > { %287 = vst [vmem:[%s3107_s27 + $0x70] sm:$0xff] %v286_v14   ;;  %v298_v17 = vld [vmem:[%s3102_s17 + $0x108] sm:$0xff]   ;;  %291 = vst [vmem:[%s3107_s27 + $0x78] sm:$0xff] %v290_v15   ;;  %v302_v18 = vld [vmem:[%s3102_s17 + $0x110] sm:$0xff]  }
  0x24   : > { %295 = vst [vmem:[%s3107_s27 + $0x80] sm:$0xff] %v294_v16   ;;  %299 = vst [vmem:[%s3107_s27 + $0x88] sm:$0xff] %v298_v17   ;;  %v306_v19 = vld [vmem:[%s3102_s17 + $0x118] sm:$0xff]   ;;  %v310_v20 = vld [vmem:[%s3102_s17 + $0x140] sm:$0xff]  }
  0x25   : > { %303 = vst [vmem:[%s3107_s27 + $0x90] sm:$0xff] %v302_v18   ;;  %307 = vst [vmem:[%s3107_s27 + $0x98] sm:$0xff] %v306_v19   ;;  %v314_v21 = vld [vmem:[%s3102_s17 + $0x148] sm:$0xff]   ;;  %v318_v22 = vld [vmem:[%s3102_s17 + $0x150] sm:$0xff]  }
  0x26   : > { %311 = vst [vmem:[%s3107_s27 + $0xa0] sm:$0xff] %v310_v20   ;;  %v322_v23 = vld [vmem:[%s3102_s17 + $0x158] sm:$0xff]   ;;  %315 = vst [vmem:[%s3107_s27 + $0xa8] sm:$0xff] %v314_v21   ;;  %v326_v24 = vld [vmem:[%s3102_s17 + $0x180] sm:$0xff]  }
  0x27   : > { %319 = vst [vmem:[%s3107_s27 + $0xb0] sm:$0xff] %v318_v22   ;;  %323 = vst [vmem:[%s3107_s27 + $0xb8] sm:$0xff] %v322_v23   ;;  %v330_v25 = vld [vmem:[%s3102_s17 + $0x188] sm:$0xff]   ;;  %v334_v26 = vld [vmem:[%s3102_s17 + $0x190] sm:$0xff]  }
  0x28   : > { %327 = vst [vmem:[%s3107_s27 + $0xc0] sm:$0xff] %v326_v24   ;;  %331 = vst [vmem:[%s3107_s27 + $0xc8] sm:$0xff] %v330_v25   ;;  %v338_v27 = vld [vmem:[%s3102_s17 + $0x198] sm:$0xff]   ;;  %v342_v28 = vld [vmem:[%s3102_s17 + $0x1c0] sm:$0xff]  }
  0x29   : > { %335 = vst [vmem:[%s3107_s27 + $0xd0] sm:$0xff] %v334_v26   ;;  %v346_v29 = vld [vmem:[%s3102_s17 + $0x1c8] sm:$0xff]   ;;  %339 = vst [vmem:[%s3107_s27 + $0xd8] sm:$0xff] %v338_v27   ;;  %v350_v30 = vld [vmem:[%s3102_s17 + $0x1d0] sm:$0xff]  }
  0x2a   : > { %343 = vst [vmem:[%s3107_s27 + $0xe0] sm:$0xff] %v342_v28   ;;  %347 = vst [vmem:[%s3107_s27 + $0xe8] sm:$0xff] %v346_v29   ;;  %v354_v31 = vld [vmem:[%s3102_s17 + $0x1d8] sm:$0xff]  }
  0x2b   : > { %351 = vst [vmem:[%s3107_s27 + $0xf0] sm:$0xff] %v350_v30   ;;  %355 = vst [vmem:[%s3107_s27 + $0xf8] sm:$0xff] %v354_v31  }
  0x2c PF: > { %p2401_p9 = scmp.ge.s32.totalorder %s3003_s24, 1  ;;  %p507_p10 = scmp.lt.s32.totalorder %s3003_s24, 5 }
  0x2e   : > { %p508_p11 = pnand %p2401_p9, %p507_p10 }
  0x2f   : > { %v2916_v32 = vld [vmem:[%s3875_s1] sm:$0xff] (!%p508_p11)   ;;  %s514_s6 = sand.u32 (!%p508_p11), 1, %s2979_s18   ;;  %vm624_vm0 = vcmask (!%p508_p11), 130048   ;;  %vm734_vm1 = vcmask (!%p508_p11), 60416   ;;  %s3005_s12 = smov (!%p508_p11), 112  }
  0x30   : > { %511 = sbr.rel (%p508_p11) target bundleno = 467 (0x1d3), region = 69  ;;  %s3176_s7 = sshll.u32 (!%p508_p11), %s514_s6, 8  ;;  %2778 = vmatprep.subr.bf16.mxu0 (!%p508_p11), %v2916_v32  ;;  %2788 = vmatprep.subr.bf16.mxu1 (!%p508_p11), %v2916_v32  ;;  %v3248_v1 = vld [vmem:[%s3876_s2] ss:$0 sm:$0xff] (!%p508_p11) }
  0x31   : > { %2779 = vmatpush3.bf16.msra.mxu0 (!%p508_p11), %v2916_v32  ;;  %2789 = vmatpush3.bf16.msra.mxu1 (!%p508_p11), %v2916_v32  ;;  %s3179_s9 = scalar_lea.vmem (!%p508_p11), [#allocation2], %s3176_s7  ;;  %s3277_s11 = scalar_lea.vmem (!%p508_p11), [#allocation3], %s3176_s7 }
  0x32   : > { %v2917_v33 = vld [vmem:[%s3179_s9] sm:$0xff] (!%p508_p11)   ;;  %2798 = vmatprep.subr.bf16.mxu0 (!%p508_p11), %v2916_v32  ;;  %2808 = vmatprep.subr.bf16.mxu1 (!%p508_p11), %v2916_v32  ;;  %v2919_v35 = vld [vmem:[%s3179_s9 + $0x8] sm:$0xff] (!%p508_p11)   ;;  %v2921_v37 = vld [vmem:[%s3179_s9 + $0x10] sm:$0xff] (!%p508_p11)   ;;  %s3006_s13 = smov (!%p508_p11), 120   ;;  %s3742_s14 = sshll.u32 (!%p508_p11), %s2987_s20, 3 }
  0x33   : > { %v2918_v34 = vld [vmem:[%s3179_s9 + $0x20] sm:$0xff] (!%p508_p11)   ;;  %2780 = vmatprep.mubr.msk.bf16.mxu0 (!%p508_p11), %vm624_vm0, %v2917_v33  ;;  %v2920_v36 = vld [vmem:[%s3179_s9 + $0x28] sm:$0xff] (!%p508_p11)   ;;  %v2922_v38 = vld [vmem:[%s3179_s9 + $0x30] sm:$0xff] (!%p508_p11)   ;;  %p561_p12 = scmp.lt.s32.totalorder (!%p508_p11), %s2991_s21, 1  ;;  %p563_p13 = scmp.lt.s32.totalorder (!%p508_p11), %s3742_s14, 15 }
  0x34   : > { %2790 = vmatprep.mubr.msk.bf16.mxu1 (!%p508_p11), %vm624_vm0, %v2918_v34  ;;  %2781 = vmatmul.mubr.msk.bf16.vlgmr.msra.gmra.mrb[0].mxu0 (!%p508_p11), %vm624_vm0, %v2919_v35  ;;  %v2923_v39 = vld [vmem:[%s3179_s9 + $0x18] sm:$0xff] (!%p508_p11)   ;;  %v2925_v41 = vld [vmem:[%s3179_s9 + $0x40] sm:$0xff] (!%p508_p11)   ;;  %v2927_v43 = vld [vmem:[%s3179_s9 + $0x48] sm:$0xff] (!%p508_p11)  }
  0x35   : > { %2791 = vmatmul.mubr.msk.bf16.vlgmr.msra.gmra.mrb[0].mxu1 (!%p508_p11), %vm624_vm0, %v2920_v36  ;;  %2799 = vmatpush3.bf16.msra.mxu0 (!%p508_p11), %v2916_v32  ;;  %v2924_v40 = vld [vmem:[%s3179_s9 + $0x38] sm:$0xff] (!%p508_p11)   ;;  %v2926_v42 = vld [vmem:[%s3179_s9 + $0x60] sm:$0xff] (!%p508_p11)   ;;  %v2928_v44 = vld [vmem:[%s3179_s9 + $0x68] sm:$0xff] (!%p508_p11)  }
  0x36   : > { %2809 = vmatpush3.bf16.msra.mxu1 (!%p508_p11), %v2916_v32  ;;  %2784 = vmatprep.mubr.msk.bf16.mxu0 (!%p508_p11), %vm624_vm0, %v2921_v37  ;;  %v2929_v45 = vld [vmem:[%s3179_s9 + $0x50] sm:$0xff] (!%p508_p11)   ;;  %v2931_v47 = vld [vmem:[%s3179_s9 + $0x58] sm:$0xff] (!%p508_p11)   ;;  %v2933_v49 = vld [vmem:[%s3179_s9 + $0x80] sm:$0xff] (!%p508_p11)  }
  0x37   : > { %2794 = vmatprep.mubr.msk.bf16.mxu1 %vm624_vm0, %v2922_v38  ;;  %2818 = vmatprep.subr.bf16.mxu0 %v2916_v32  ;;  %v2930_v46 = vld [vmem:[%s3179_s9 + $0x70] sm:$0xff]   ;;  %v2932_v48 = vld [vmem:[%s3179_s9 + $0x78] sm:$0xff]   ;;  %v2934_v50 = vld [vmem:[%s3179_s9 + $0xa0] sm:$0xff]   ;;  %s562_s15 = scalar_select %p561_p12, %s2991_s21, 1 }
  0x38   : > { %2828 = vmatprep.subr.bf16.mxu1 %v2916_v32  ;;  %v2935_v51 = vld [vmem:[%s3179_s9 + $0x88] sm:$0xff]   ;;  %v2937_v53 = vld [vmem:[%s3179_s9 + $0x90] sm:$0xff]   ;;  %v2939_v55 = vld [vmem:[%s3179_s9 + $0x98] sm:$0xff]   ;;  %s564_s16 = scalar_select %p563_p13, %s3742_s14, 15 }
  0x39   : > { %v2936_v52 = vld [vmem:[%s3179_s9 + $0xa8] sm:$0xff]   ;;  %v2938_v54 = vld [vmem:[%s3179_s9 + $0xb0] sm:$0xff]   ;;  %v2940_v56 = vld [vmem:[%s3179_s9 + $0xb8] sm:$0xff]   ;;  %s2405_s17 = sshll.u32 %s562_s15, 4  ;;  %s2662_s10 = sshll.u32 (%p3085_p6), %s2991_s21, 7 }
  0x3a   : > { %v2941_v57 = vld [vmem:[%s3179_s9 + $0xc0] sm:$0xff]   ;;  %v2943_v59 = vld [vmem:[%s3179_s9 + $0xc8] sm:$0xff]   ;;  %v2945_v61 = vld [vmem:[%s3179_s9 + $0xd0] sm:$0xff]   ;;  %s566_s27 = sadd.s32 %s2405_s17, %s564_s16  ;;  %s1943_s29 = sadd.s32 (%p3085_p6), %s2662_s10, %s3742_s14 }
  0x3b   : > { %v2942_v58 = vld [vmem:[%s3179_s9 + $0xe0] sm:$0xff]   ;;  %v2944_v60 = vld [vmem:[%s3179_s9 + $0xe8] sm:$0xff]   ;;  %v2947_v62 = vld [vmem:[%s3179_s9 + $0xf0] sm:$0xff]   ;;  %s2406_s28 = sshll.u32 %s566_s27, 2 }
  0x3c   : > { %2785 = vmatmul.mubr.msk.bf16.gmra.mrb[4].mxu0 %vm624_vm0, %v2923_v39  ;;  %v2946_v63 = vld [vmem:[%s3179_s9 + $0xd8] sm:$0xff]   ;;  %s3751_s7 = scalar_lea.vmem %s3879_s5, %s2406_s28  ;;  %s568_s20 = scalar_lea.vmem %s3878_s4, %s2406_s28 }
  0x3d   : > { %2795 = vmatmul.mubr.msk.bf16.gmra.mrb[4].mxu1 %vm624_vm0, %v2924_v40  ;;  %2800 = vmatprep.mubr.msk.bf16.mxu0 %vm624_vm0, %v2925_v41  ;;  %v2948_v0 = vld [vmem:[%s3179_s9 + $0xf8] sm:$0xff]  }
  0x3e   : > { %2810 = vmatprep.mubr.msk.bf16.mxu1 %vm624_vm0, %v2926_v42 }
  0x44   : > { %2801 = vmatmul.mubr.msk.bf16.vlgmr.msra.gmra.mrb[8].mxu0 %vm624_vm0, %v2927_v43 }
  0x45   : > { %2811 = vmatmul.mubr.msk.bf16.vlgmr.msra.gmra.mrb[8].mxu1 %vm624_vm0, %v2928_v44  ;;  %2819 = vmatpush3.bf16.msra.mxu0 %v2916_v32 }
  0x46   : > { %2829 = vmatpush3.bf16.msra.mxu1 %v2916_v32  ;;  %2804 = vmatprep.mubr.msk.bf16.mxu0 %vm624_vm0, %v2929_v45 }
  0x47   : > { %2814 = vmatprep.mubr.msk.bf16.mxu1 %vm624_vm0, %v2930_v46  ;;  %2838 = vmatprep.subr.bf16.mxu0 %v2916_v32 }
  0x48   : > { %2848 = vmatprep.subr.bf16.mxu1 %v2916_v32 }
  0x4c   : > { %2805 = vmatmul.mubr.msk.bf16.gmra.mrb[12].mxu0 %vm624_vm0, %v2931_v47 }
  0x4d   : > { %2815 = vmatmul.mubr.msk.bf16.gmra.mrb[12].mxu1 %vm624_vm0, %v2932_v48  ;;  %2820 = vmatprep.mubr.msk.bf16.mxu0 %vm624_vm0, %v2933_v49 }
  0x4e   : > { %2830 = vmatprep.mubr.msk.bf16.mxu1 %vm624_vm0, %v2934_v50 }
  0x54   : > { %2821 = vmatmul.mubr.msk.bf16.vlgmr.msra.gmra.mrb[16].mxu0 %vm624_vm0, %v2935_v51 }
  0x55   : > { %2831 = vmatmul.mubr.msk.bf16.vlgmr.msra.gmra.mrb[16].mxu1 %vm624_vm0, %v2936_v52  ;;  %2839 = vmatpush3.bf16.msra.mxu0 %v2916_v32 }
  0x56   : > { %2849 = vmatpush3.bf16.msra.mxu1 %v2916_v32  ;;  %2824 = vmatprep.mubr.msk.bf16.mxu0 %vm624_vm0, %v2937_v53 }
  0x57   : > { %2834 = vmatprep.mubr.msk.bf16.mxu1 %vm624_vm0, %v2938_v54 }
  0x5c   : > { %2825 = vmatmul.mubr.msk.bf16.gmra.mrb[20].mxu0 %vm624_vm0, %v2939_v55 }
  0x5d   : > { %2835 = vmatmul.mubr.msk.bf16.gmra.mrb[20].mxu1 %vm624_vm0, %v2940_v56  ;;  %2840 = vmatprep.mubr.msk.bf16.mxu0 %vm624_vm0, %v2941_v57 }
  0x5e   : > { %2850 = vmatprep.mubr.msk.bf16.mxu1 %vm624_vm0, %v2942_v58 }
  0x64   : > { %2841 = vmatmul.mubr.msk.bf16.vlgmr.msra.gmra.mrb[24].mxu0 %vm624_vm0, %v2943_v59 }
  0x65   : > { %2851 = vmatmul.mubr.msk.bf16.vlgmr.msra.gmra.mrb[24].mxu1 %vm624_vm0, %v2944_v60  ;;  %2844 = vmatprep.mubr.msk.bf16.mxu0 %vm624_vm0, %v2945_v61 }
  0x66   : > { %2854 = vmatprep.mubr.msk.bf16.mxu1 %vm624_vm0, %v2947_v62 }
  0x6c   : > { %2845 = vmatmul.mubr.msk.bf16.gmra.mrb[28].mxu0 %vm624_vm0, %v2946_v63 }
  0x6d   : > { %2855 = vmatmul.mubr.msk.bf16.gmra.mrb[28].mxu1 %vm624_vm0, %v2948_v0 }
 0x107   : > { %v2782_v2 = vpop.f32.mrb[0].mxu0 }
 0x108   : > { %v3251_v3 = vadd.f32 %v2782_v2, %v3248_v1  ;;  %v2792_v4 = vpop.f32.mrb[0].mxu1  ;;  %v671_v5 = vpop.f32.mrb[1].mxu0 }
 0x109   : > { %v3254_v6 = vadd.f32 %v2792_v4, %v3248_v1  ;;  %v3257_v7 = vadd.f32 %v3248_v1, %v671_v5  ;;  %v818_v8 = vpop.f32.mrb[1].mxu1  ;;  %v2783_v9 = vpop.f32.mrb[2].mxu0 }
 0x10a   : > { %v2668_v10 = vpack.c.bf16 %v3251_v3, %v3251_v3  ;;  %v3262_v11 = vadd.f32 %v3248_v1, %v818_v8  ;;  %v3265_v12 = vadd.f32 %v2783_v9, %v3248_v1  ;;  %v2793_v13 = vpop.f32.mrb[2].mxu1  ;;  %v674_v14 = vpop.f32.mrb[3].mxu0 }
 0x10b   : > { %v2676_v15 = vpack.c.bf16 %v3254_v6, %v3254_v6  ;;  %v892_v16 = vmax.f32 %v3251_v3, %v3254_v6  ;;  %v2666_v17 = vpack.c.bf16 %v3257_v7, %v3257_v7  ;;  %v3274_v18 = vadd.f32 %v2793_v13, %v3248_v1  ;;  %v821_v19 = vpop.f32.mrb[3].mxu1 }
 0x10c   : > { %737 = vst.msk [vmem:[%s3277_s11 + $0x8] sm:$0xf] %vm734_vm1, %v2668_v10  ;;  %v2674_v20 = vpack.c.bf16 %v3262_v11, %v3262_v11  ;;  %v890_v21 = vmax.f32 %v3257_v7, %v3262_v11  ;;  %v2669_v22 = vpack.c.bf16 %v3265_v12, %v3265_v12  ;;  %v3288_v23 = vadd.f32 %v3248_v1, %v674_v14 }
 0x10d   : > { %2454 = vst.msk [vmem:[%s3277_s11 + $0x28] sm:$0xf] %vm734_vm1, %v2676_v15  ;;  %735 = vst.msk [vmem:[%s3277_s11] sm:$0xf] %vm734_vm1, %v2666_v17  ;;  %v2677_v24 = vpack.c.bf16 %v3274_v18, %v3274_v18  ;;  %v893_v25 = vmax.f32 %v3265_v12, %v3274_v18  ;;  %v3299_v26 = vadd.f32 %v3248_v1, %v821_v19 }
 0x10e   : > { %2452 = vst.msk [vmem:[%s3277_s11 + $0x20] sm:$0xf] %vm734_vm1, %v2674_v20  ;;  %738 = vst.msk [vmem:[%s3277_s11 + $0xc] sm:$0xf] %vm734_vm1, %v2669_v22  ;;  %v2667_v27 = vpack.c.bf16 %v3288_v23, %v3288_v23 }
 0x10f   : > { %2455 = vst.msk [vmem:[%s3277_s11 + $0x2c] sm:$0xf] %vm734_vm1, %v2677_v24  ;;  %v2675_v28 = vpack.c.bf16 %v3299_v26, %v3299_v26  ;;  %v891_v29 = vmax.f32 %v3288_v23, %v3299_v26  ;;  %v2786_v30 = vpop.f32.mrb[4].mxu0 }
 0x110   : > { %736 = vst.msk [vmem:[%s3277_s11 + $0x4] sm:$0xf] %vm734_vm1, %v2667_v27  ;;  %v3316_v31 = vadd.f32 %v2786_v30, %v3248_v1  ;;  %v2796_v32 = vpop.f32.mrb[4].mxu1  ;;  %v687_v33 = vpop.f32.mrb[5].mxu0 }
 0x111   : > { %2453 = vst.msk [vmem:[%s3277_s11 + $0x24] sm:$0xf] %vm734_vm1, %v2675_v28  ;;  %v3321_v34 = vadd.f32 %v2796_v32, %v3248_v1  ;;  %v3324_v35 = vadd.f32 %v3248_v1, %v687_v33  ;;  %v834_v36 = vpop.f32.mrb[5].mxu1  ;;  %v2787_v37 = vpop.f32.mrb[6].mxu0 }
 0x112   : > { %v2672_v38 = vpack.c.bf16 %v3316_v31, %v3316_v31  ;;  %v3329_v39 = vadd.f32 %v3248_v1, %v834_v36  ;;  %v3332_v40 = vadd.f32 %v2787_v37, %v3248_v1  ;;  %v2797_v41 = vpop.f32.mrb[6].mxu1  ;;  %v690_v42 = vpop.f32.mrb[7].mxu0 }
 0x113   : > { %v2680_v43 = vpack.c.bf16 %v3321_v34, %v3321_v34  ;;  %v896_v44 = vmax.f32 %v3316_v31, %v3321_v34  ;;  %v2670_v45 = vpack.c.bf16 %v3324_v35, %v3324_v35  ;;  %v3341_v46 = vadd.f32 %v2797_v41, %v3248_v1  ;;  %v837_v47 = vpop.f32.mrb[7].mxu1 }
 0x114   : > { %741 = vst.msk [vmem:[%s3277_s11 + $0x18] sm:$0xf] %vm734_vm1, %v2672_v38  ;;  %v2678_v48 = vpack.c.bf16 %v3329_v39, %v3329_v39  ;;  %v894_v49 = vmax.f32 %v3324_v35, %v3329_v39  ;;  %v2673_v50 = vpack.c.bf16 %v3332_v40, %v3332_v40  ;;  %v3352_v51 = vadd.f32 %v3248_v1, %v690_v42 }
 0x115   : > { %2458 = vst.msk [vmem:[%s3277_s11 + $0x38] sm:$0xf] %vm734_vm1, %v2680_v43  ;;  %739 = vst.msk [vmem:[%s3277_s11 + $0x10] sm:$0xf] %vm734_vm1, %v2670_v45  ;;  %v2681_v52 = vpack.c.bf16 %v3341_v46, %v3341_v46  ;;  %v897_v53 = vmax.f32 %v3332_v40, %v3341_v46  ;;  %v3363_v54 = vadd.f32 %v3248_v1, %v837_v47 }
 0x116   : > { %2456 = vst.msk [vmem:[%s3277_s11 + $0x30] sm:$0xf] %vm734_vm1, %v2678_v48  ;;  %742 = vst.msk [vmem:[%s3277_s11 + $0x1c] sm:$0xf] %vm734_vm1, %v2673_v50  ;;  %v2671_v55 = vpack.c.bf16 %v3352_v51, %v3352_v51 }
 0x117   : > { %2459 = vst.msk [vmem:[%s3277_s11 + $0x3c] sm:$0xf] %vm734_vm1, %v2681_v52  ;;  %v2679_v56 = vpack.c.bf16 %v3363_v54, %v3363_v54  ;;  %v895_v57 = vmax.f32 %v3352_v51, %v3363_v54  ;;  %v2802_v58 = vpop.f32.mrb[8].mxu0 }
 0x118   : > { %740 = vst.msk [vmem:[%s3277_s11 + $0x14] sm:$0xf] %vm734_vm1, %v2671_v55  ;;  %v982_v59 = vadd.f32 %v2802_v58, %v3248_v1  ;;  %v2812_v60 = vpop.f32.mrb[8].mxu1  ;;  %v973_v61 = vpop.f32.mrb[9].mxu0 }
 0x119   : > { %2457 = vst.msk [vmem:[%s3277_s11 + $0x34] sm:$0xf] %vm734_vm1, %v2679_v56  ;;  %v3383_v62 = vadd.f32 %v2812_v60, %v3248_v1  ;;  %v974_v63 = vadd.f32 %v3248_v1, %v973_v61  ;;  %v1128_v0 = vpop.f32.mrb[9].mxu1  ;;  %v2803_v2 = vpop.f32.mrb[10].mxu0 }
 0x11a   : > { %v2684_v4 = vpack.c.bf16 %v982_v59, %v982_v59  ;;  %v3389_v5 = vmax.f32 %v892_v16, %v982_v59  ;;  %v3392_v8 = vadd.f32 %v3248_v1, %v1128_v0  ;;  %v985_v9 = vadd.f32 %v2803_v2, %v3248_v1  ;;  %v2813_v10 = vpop.f32.mrb[10].mxu1  ;;  %v976_v13 = vpop.f32.mrb[11].mxu0 }
 0x11b   : > { %v2692_v14 = vpack.c.bf16 %v3383_v62, %v3383_v62  ;;  %v2682_v15 = vpack.c.bf16 %v974_v63, %v974_v63  ;;  %v3400_v3 = vmax.f32 %v890_v21, %v974_v63  ;;  %v3403_v6 = vadd.f32 %v2813_v10, %v3248_v1  ;;  %v1131_v16 = vpop.f32.mrb[11].mxu1 }
 0x11c   : > { %2486 = vst.msk [vmem:[%s3277_s11 + $0x48] sm:$0xf] %vm734_vm1, %v2684_v4  ;;  %v1202_v17 = vmax.f32 %v3389_v5, %v3383_v62  ;;  %v2690_v19 = vpack.c.bf16 %v3392_v8, %v3392_v8  ;;  %v2685_v20 = vpack.c.bf16 %v985_v9, %v985_v9  ;;  %v3414_v7 = vmax.f32 %v893_v25, %v985_v9 }
 0x11d   : > { %2518 = vst.msk [vmem:[%s3277_s11 + $0x68] sm:$0xf] %vm734_vm1, %v2692_v14  ;;  %2484 = vst.msk [vmem:[%s3277_s11 + $0x40] sm:$0xf] %vm734_vm1, %v2682_v15  ;;  %v1200_v11 = vmax.f32 %v3400_v3, %v3392_v8  ;;  %v2693_v21 = vpack.c.bf16 %v3403_v6, %v3403_v6  ;;  %v977_v22 = vadd.f32 %v3248_v1, %v976_v13 }
 0x11e   : > { %v3426_v24 = vadd.f32 %v3248_v1, %v1131_v16  ;;  %2516 = vst.msk [vmem:[%s3277_s11 + $0x60] sm:$0xf] %vm734_vm1, %v2690_v19  ;;  %2487 = vst.msk [vmem:[%s3277_s11 + $0x4c] sm:$0xf] %vm734_vm1, %v2685_v20  ;;  %v1203_v12 = vmax.f32 %v3414_v7, %v3403_v6 }
 0x11f   : > { %2519 = vst.msk [vmem:[%s3277_s11 + $0x6c] sm:$0xf] %vm734_vm1, %v2693_v21  ;;  %v2683_v18 = vpack.c.bf16 %v977_v22, %v977_v22  ;;  %v3439_v25 = vmax.f32 %v891_v29, %v977_v22  ;;  %v2806_v28 = vpop.f32.mrb[12].mxu0 }
 0x120   : > { %v2691_v27 = vpack.c.bf16 %v3426_v24, %v3426_v24  ;;  %v998_v30 = vadd.f32 %v2806_v28, %v3248_v1  ;;  %v2816_v32 = vpop.f32.mrb[12].mxu1  ;;  %v989_v33 = vpop.f32.mrb[13].mxu0 }
 0x121   : > { %2485 = vst.msk [vmem:[%s3277_s11 + $0x44] sm:$0xf] %vm734_vm1, %v2683_v18  ;;  %v1201_v36 = vmax.f32 %v3439_v25, %v3426_v24  ;;  %v3451_v23 = vadd.f32 %v2816_v32, %v3248_v1  ;;  %v990_v26 = vadd.f32 %v3248_v1, %v989_v33  ;;  %v1144_v29 = vpop.f32.mrb[13].mxu1  ;;  %v2807_v37 = vpop.f32.mrb[14].mxu0 }
 0x122   : > { %2517 = vst.msk [vmem:[%s3277_s11 + $0x64] sm:$0xf] %vm734_vm1, %v2691_v27  ;;  %v2688_v38 = vpack.c.bf16 %v998_v30, %v998_v30  ;;  %v3457_v41 = vmax.f32 %v896_v44, %v998_v30  ;;  %v3460_v42 = vadd.f32 %v3248_v1, %v1144_v29  ;;  %v1001_v43 = vadd.f32 %v2807_v37, %v3248_v1  ;;  %v2817_v45 = vpop.f32.mrb[14].mxu1  ;;  %v992_v47 = vpop.f32.mrb[15].mxu0 }
 0x123   : > { %v2696_v48 = vpack.c.bf16 %v3451_v23, %v3451_v23  ;;  %v2686_v50 = vpack.c.bf16 %v990_v26, %v990_v26  ;;  %v3468_v31 = vmax.f32 %v894_v49, %v990_v26  ;;  %v3471_v34 = vadd.f32 %v2817_v45, %v3248_v1  ;;  %v1147_v44 = vpop.f32.mrb[15].mxu1 }
 0x124   : > { %2490 = vst.msk [vmem:[%s3277_s11 + $0x58] sm:$0xf] %vm734_vm1, %v2688_v38  ;;  %v1206_v52 = vmax.f32 %v3457_v41, %v3451_v23  ;;  %v2694_v55 = vpack.c.bf16 %v3460_v42, %v3460_v42  ;;  %v2689_v56 = vpack.c.bf16 %v1001_v43, %v1001_v43  ;;  %v3482_v35 = vmax.f32 %v897_v53, %v1001_v43 }
 0x125   : > { %2522 = vst.msk [vmem:[%s3277_s11 + $0x78] sm:$0xf] %vm734_vm1, %v2696_v48  ;;  %2488 = vst.msk [vmem:[%s3277_s11 + $0x50] sm:$0xf] %vm734_vm1, %v2686_v50  ;;  %v1204_v39 = vmax.f32 %v3468_v31, %v3460_v42  ;;  %v2697_v49 = vpack.c.bf16 %v3471_v34, %v3471_v34  ;;  %v993_v58 = vadd.f32 %v3248_v1, %v992_v47 }
 0x126   : > { %v3494_v59 = vadd.f32 %v3248_v1, %v1147_v44  ;;  %2520 = vst.msk [vmem:[%s3277_s11 + $0x70] sm:$0xf] %vm734_vm1, %v2694_v55  ;;  %2491 = vst.msk [vmem:[%s3277_s11 + $0x5c] sm:$0xf] %vm734_vm1, %v2689_v56  ;;  %v1207_v40 = vmax.f32 %v3482_v35, %v3471_v34 }
 0x127   : > { %2523 = vst.msk [vmem:[%s3277_s11 + $0x7c] sm:$0xf] %vm734_vm1, %v2697_v49  ;;  %v2687_v46 = vpack.c.bf16 %v993_v58, %v993_v58  ;;  %v3507_v53 = vmax.f32 %v895_v57, %v993_v58  ;;  %v2822_v61 = vpop.f32.mrb[16].mxu0 }
 0x128   : > { %v2695_v60 = vpack.c.bf16 %v3494_v59, %v3494_v59  ;;  %v1292_v63 = vadd.f32 %v2822_v61, %v3248_v1  ;;  %v2832_v0 = vpop.f32.mrb[16].mxu1  ;;  %v1283_v2 = vpop.f32.mrb[17].mxu0 }
 0x129   : > { %2489 = vst.msk [vmem:[%s3277_s11 + $0x54] sm:$0xf] %vm734_vm1, %v2687_v46  ;;  %v1205_v4 = vmax.f32 %v3507_v53, %v3494_v59  ;;  %v3519_v51 = vadd.f32 %v2832_v0, %v3248_v1  ;;  %v1284_v54 = vadd.f32 %v3248_v1, %v1283_v2  ;;  %v1438_v57 = vpop.f32.mrb[17].mxu1  ;;  %v2823_v9 = vpop.f32.mrb[18].mxu0 }
 0x12a   : > { %2521 = vst.msk [vmem:[%s3277_s11 + $0x74] sm:$0xf] %vm734_vm1, %v2695_v60  ;;  %v2700_v10 = vpack.c.bf16 %v1292_v63, %v1292_v63  ;;  %v3525_v13 = vmax.f32 %v1202_v17, %v1292_v63  ;;  %v3528_v14 = vadd.f32 %v3248_v1, %v1438_v57  ;;  %v1295_v15 = vadd.f32 %v2823_v9, %v3248_v1  ;;  %v2833_v16 = vpop.f32.mrb[18].mxu1  ;;  %v1286_v19 = vpop.f32.mrb[19].mxu0 }
 0x12b   : > { %v2708_v20 = vpack.c.bf16 %v3519_v51, %v3519_v51  ;;  %v2698_v21 = vpack.c.bf16 %v1284_v54, %v1284_v54  ;;  %v3536_v62 = vmax.f32 %v1200_v11, %v1284_v54  ;;  %v3539_v5 = vadd.f32 %v2833_v16, %v3248_v1  ;;  %v1441_v17 = vpop.f32.mrb[19].mxu1 }
 0x12c   : > { %2550 = vst.msk [vmem:[%s3277_s11 + $0x88] sm:$0xf] %vm734_vm1, %v2700_v10  ;;  %v1512_v22 = vmax.f32 %v3525_v13, %v3519_v51  ;;  %v2706_v18 = vpack.c.bf16 %v3528_v14, %v3528_v14  ;;  %v2701_v27 = vpack.c.bf16 %v1295_v15, %v1295_v15  ;;  %v3550_v8 = vmax.f32 %v1203_v12, %v1295_v15 }
 0x12d   : > { %2582 = vst.msk [vmem:[%s3277_s11 + $0xa8] sm:$0xf] %vm734_vm1, %v2708_v20  ;;  %2548 = vst.msk [vmem:[%s3277_s11 + $0x80] sm:$0xf] %vm734_vm1, %v2698_v21  ;;  %v1510_v3 = vmax.f32 %v3536_v62, %v3528_v14  ;;  %v2709_v11 = vpack.c.bf16 %v3539_v5, %v3539_v5  ;;  %v1287_v28 = vadd.f32 %v3248_v1, %v1286_v19 }
 0x12e   : > { %v3562_v30 = vadd.f32 %v3248_v1, %v1441_v17  ;;  %2580 = vst.msk [vmem:[%s3277_s11 + $0xa0] sm:$0xf] %vm734_vm1, %v2706_v18  ;;  %2551 = vst.msk [vmem:[%s3277_s11 + $0x8c] sm:$0xf] %vm734_vm1, %v2701_v27  ;;  %v1513_v6 = vmax.f32 %v3550_v8, %v3539_v5 }
 0x12f   : > { %2583 = vst.msk [vmem:[%s3277_s11 + $0xac] sm:$0xf] %vm734_vm1, %v2709_v11  ;;  %v2699_v7 = vpack.c.bf16 %v1287_v28, %v1287_v28  ;;  %v3575_v12 = vmax.f32 %v1201_v36, %v1287_v28  ;;  %v2826_v33 = vpop.f32.mrb[20].mxu0 }
 0x130   : > { %v2707_v32 = vpack.c.bf16 %v3562_v30, %v3562_v30  ;;  %v1308_v26 = vadd.f32 %v2826_v33, %v3248_v1  ;;  %v2836_v29 = vpop.f32.mrb[20].mxu1  ;;  %v1299_v37 = vpop.f32.mrb[21].mxu0 }
 0x131   : > { %2549 = vst.msk [vmem:[%s3277_s11 + $0x84] sm:$0xf] %vm734_vm1, %v2699_v7  ;;  %v1511_v38 = vmax.f32 %v3575_v12, %v3562_v30  ;;  %v3587_v24 = vadd.f32 %v2836_v29, %v3248_v1  ;;  %v1300_v25 = vadd.f32 %v3248_v1, %v1299_v37  ;;  %v1454_v36 = vpop.f32.mrb[21].mxu1  ;;  %v2827_v43 = vpop.f32.mrb[22].mxu0 }
 0x132   : > { %2581 = vst.msk [vmem:[%s3277_s11 + $0xa4] sm:$0xf] %vm734_vm1, %v2707_v32  ;;  %v2704_v45 = vpack.c.bf16 %v1308_v26, %v1308_v26  ;;  %v3593_v47 = vmax.f32 %v1206_v52, %v1308_v26  ;;  %v3596_v48 = vadd.f32 %v3248_v1, %v1454_v36  ;;  %v1311_v50 = vadd.f32 %v2827_v43, %v3248_v1  ;;  %v2837_v44 = vpop.f32.mrb[22].mxu1  ;;  %v1302_v55 = vpop.f32.mrb[23].mxu0 }
 0x133   : > { %v2712_v56 = vpack.c.bf16 %v3587_v24, %v3587_v24  ;;  %v2702_v49 = vpack.c.bf16 %v1300_v25, %v1300_v25  ;;  %v3604_v23 = vmax.f32 %v1204_v39, %v1300_v25  ;;  %v3607_v41 = vadd.f32 %v2837_v44, %v3248_v1  ;;  %v1457_v52 = vpop.f32.mrb[23].mxu1 }
 0x134   : > { %2554 = vst.msk [vmem:[%s3277_s11 + $0x98] sm:$0xf] %vm734_vm1, %v2704_v45  ;;  %v1516_v58 = vmax.f32 %v3593_v47, %v3587_v24  ;;  %v2710_v46 = vpack.c.bf16 %v3596_v48, %v3596_v48  ;;  %v2705_v60 = vpack.c.bf16 %v1311_v50, %v1311_v50  ;;  %v3618_v42 = vmax.f32 %v1207_v40, %v1311_v50 }
 0x135   : > { %2586 = vst.msk [vmem:[%s3277_s11 + $0xb8] sm:$0xf] %vm734_vm1, %v2712_v56  ;;  %2552 = vst.msk [vmem:[%s3277_s11 + $0x90] sm:$0xf] %vm734_vm1, %v2702_v49  ;;  %v1514_v31 = vmax.f32 %v3604_v23, %v3596_v48  ;;  %v2713_v39 = vpack.c.bf16 %v3607_v41, %v3607_v41  ;;  %v1303_v61 = vadd.f32 %v3248_v1, %v1302_v55 }
 0x136   : > { %v3630_v63 = vadd.f32 %v3248_v1, %v1457_v52  ;;  %2584 = vst.msk [vmem:[%s3277_s11 + $0xb0] sm:$0xf] %vm734_vm1, %v2710_v46  ;;  %2555 = vst.msk [vmem:[%s3277_s11 + $0x9c] sm:$0xf] %vm734_vm1, %v2705_v60  ;;  %v1517_v34 = vmax.f32 %v3618_v42, %v3607_v41 }
 0x137   : > { %2587 = vst.msk [vmem:[%s3277_s11 + $0xbc] sm:$0xf] %vm734_vm1, %v2713_v39  ;;  %v2703_v35 = vpack.c.bf16 %v1303_v61, %v1303_v61  ;;  %v3643_v40 = vmax.f32 %v1205_v4, %v1303_v61  ;;  %v2842_v2 = vpop.f32.mrb[24].mxu0 }
 0x138   : > { %v2711_v0 = vpack.c.bf16 %v3630_v63, %v3630_v63  ;;  %v1602_v54 = vadd.f32 %v2842_v2, %v3248_v1  ;;  %v2852_v57 = vpop.f32.mrb[24].mxu1  ;;  %v1593_v9 = vpop.f32.mrb[25].mxu0 }
 0x139   : > { %2553 = vst.msk [vmem:[%s3277_s11 + $0x94] sm:$0xf] %vm734_vm1, %v2703_v35  ;;  %v1515_v10 = vmax.f32 %v3643_v40, %v3630_v63  ;;  %v1757_v59 = vadd.f32 %v2852_v57, %v3248_v1  ;;  %v1594_v53 = vadd.f32 %v3248_v1, %v1593_v9  ;;  %v1748_v4 = vpop.f32.mrb[25].mxu1  ;;  %v2843_v15 = vpop.f32.mrb[26].mxu0 }
 0x13a   : > { %2585 = vst.msk [vmem:[%s3277_s11 + $0xb4] sm:$0xf] %vm734_vm1, %v2711_v0  ;;  %v2716_v16 = vpack.c.bf16 %v1602_v54, %v1602_v54  ;;  %v1667_v19 = vmax.f32 %v1512_v22, %v1602_v54  ;;  %v1749_v20 = vadd.f32 %v3248_v1, %v1748_v4  ;;  %v1605_v21 = vadd.f32 %v2843_v15, %v3248_v1  ;;  %v2853_v17 = vpop.f32.mrb[26].mxu1  ;;  %v1596_v18 = vpop.f32.mrb[27].mxu0 }
 0x13b   : > { %v2724_v27 = vpack.c.bf16 %v1757_v59, %v1757_v59  ;;  %v2714_v11 = vpack.c.bf16 %v1594_v53, %v1594_v53  ;;  %v1665_v28 = vmax.f32 %v1510_v3, %v1594_v53  ;;  %v1760_v7 = vadd.f32 %v2853_v17, %v3248_v1  ;;  %v1751_v51 = vpop.f32.mrb[27].mxu1 }
 0x13c   : > { %2614 = vst.msk [vmem:[%s3277_s11 + $0xc8] sm:$0xf] %vm734_vm1, %v2716_v16  ;;  %v2722_v13 = vpack.c.bf16 %v1749_v20, %v1749_v20  ;;  %v2717_v22 = vpack.c.bf16 %v1605_v21, %v1605_v21  ;;  %v1668_v32 = vmax.f32 %v1513_v6, %v1605_v21  ;;  %v1597_v33 = vadd.f32 %v3248_v1, %v1596_v18 }
 0x13d   : > { %2646 = vst.msk [vmem:[%s3277_s11 + $0xe8] sm:$0xf] %vm734_vm1, %v2724_v27  ;;  %2612 = vst.msk [vmem:[%s3277_s11 + $0xc0] sm:$0xf] %vm734_vm1, %v2714_v11  ;;  %v1820_v14 = vmax.f32 %v1665_v28, %v1749_v20  ;;  %v2725_v62 = vpack.c.bf16 %v1760_v7, %v1760_v7  ;;  %v1752_v3 = vadd.f32 %v3248_v1, %v1751_v51 }
 0x13e   : > { %v1822_v26 = vmax.f32 %v1667_v19, %v1757_v59  ;;  %2644 = vst.msk [vmem:[%s3277_s11 + $0xe0] sm:$0xf] %vm734_vm1, %v2722_v13  ;;  %2615 = vst.msk [vmem:[%s3277_s11 + $0xcc] sm:$0xf] %vm734_vm1, %v2717_v22  ;;  %v1823_v29 = vmax.f32 %v1668_v32, %v1760_v7  ;;  %v2715_v5 = vpack.c.bf16 %v1597_v33, %v1597_v33 }
 0x13f   : > { %v1666_v8 = vmax.f32 %v1511_v38, %v1597_v33  ;;  %2647 = vst.msk [vmem:[%s3277_s11 + $0xec] sm:$0xf] %vm734_vm1, %v2725_v62  ;;  %v2723_v6 = vpack.c.bf16 %v1752_v3, %v1752_v3  ;;  %v2846_v37 = vpop.f32.mrb[28].mxu0  ;;  %v2730_v44 = vpack.c.bf16 %v1820_v14, %v1820_v14  ;;  %v1961_v62 = vld [vmem:[%s3277_s11] sm:$0xff] (%p3085_p6)  }
 0x140   : > { %v2732_v25 = vpack.c.bf16 %v1822_v26, %v1822_v26  ;;  %2613 = vst.msk [vmem:[%s3277_s11 + $0xc4] sm:$0xf] %vm734_vm1, %v2715_v5  ;;  %v1618_v43 = vadd.f32 %v2846_v37, %v3248_v1  ;;  %v1609_v45 = vpop.f32.mrb[29].mxu0  ;;  %v2856_v50 = vpop.f32.mrb[28].mxu1  ;;  %v2733_v56 = vpack.c.bf16 %v1823_v29, %v1823_v29  ;;  %v1969_v26 = vld [vmem:[%s3277_s11 + $0x10] sm:$0xff] (%p3085_p6)   ;;  %v1973_v29 = vld [vmem:[%s3277_s11 + $0x18] sm:$0xff] (%p3085_p6)  }
 0x141   : > { %v1821_v36 = vmax.f32 %v1666_v8, %v1752_v3  ;;  %2645 = vst.msk [vmem:[%s3277_s11 + $0xe4] sm:$0xf] %vm734_vm1, %v2723_v6  ;;  %v1610_v30 = vadd.f32 %v3248_v1, %v1609_v45  ;;  %v2847_v12 = vpop.f32.mrb[30].mxu0  ;;  %v1773_v38 = vadd.f32 %v2856_v50, %v3248_v1  ;;  %v1764_v55 = vpop.f32.mrb[29].mxu1  ;;  %v1965_v3 = vld [vmem:[%s3277_s11 + $0x8] sm:$0xff] (%p3085_p6)   ;;  %v1977_v5 = vld [vmem:[%s3277_s11 + $0x20] sm:$0xff] (%p3085_p6)  }
 0x142   : > { %1888 = vrot.lane.b32.xlu0 %v2732_v25, %s3005_s12  ;;  %1856 = vrot.lane.b32.xlu1 %v2732_v25, %s3006_s13  ;;  %v2720_v49 = vpack.c.bf16 %v1618_v43, %v1618_v43  ;;  %v1671_v52 = vmax.f32 %v1516_v58, %v1618_v43  ;;  %v1621_v46 = vadd.f32 %v2847_v12, %v3248_v1  ;;  %v1612_v60 = vpop.f32.mrb[31].mxu0  ;;  %v2857_v39 = vpop.f32.mrb[30].mxu1  ;;  %v1981_v8 = vld [vmem:[%s3277_s11 + $0x28] sm:$0xff] (%p3085_p6)   ;;  %v1985_v6 = vld [vmem:[%s3277_s11 + $0x30] sm:$0xff] (%p3085_p6)  }
 0x143   : > { %v2718_v61 = vpack.c.bf16 %v1610_v30, %v1610_v30  ;;  %v1669_v35 = vmax.f32 %v1514_v31, %v1610_v30  ;;  %v2728_v0 = vpack.c.bf16 %v1773_v38, %v1773_v38  ;;  %v1613_v2 = vadd.f32 %v3248_v1, %v1612_v60  ;;  %v1767_v54 = vpop.f32.mrb[31].mxu1  ;;  %v1989_v37 = vld [vmem:[%s3277_s11 + $0x38] sm:$0xff] (%p3085_p6)   ;;  %v1993_v25 = vld [vmem:[%s3277_s11 + $0x40] sm:$0xff] (%p3085_p6)   ;;  %v2001_v43 = vld [vmem:[%s3277_s11 + $0x50] sm:$0xff] (%p3085_p6)  }
 0x144   : > { %2618 = vst.msk [vmem:[%s3277_s11 + $0xd8] sm:$0xf] %vm734_vm1, %v2720_v49  ;;  %v2721_v24 = vpack.c.bf16 %v1621_v46, %v1621_v46  ;;  %v1672_v47 = vmax.f32 %v1517_v34, %v1621_v46  ;;  %v1826_v58 = vmax.f32 %v1671_v52, %v1773_v38  ;;  %v1765_v57 = vadd.f32 %v3248_v1, %v1764_v55  ;;  %v2005_v45 = vld [vmem:[%s3277_s11 + $0x58] sm:$0xff] (%p3085_p6)   ;;  %v2009_v50 = vld [vmem:[%s3277_s11 + $0x60] sm:$0xff] (%p3085_p6)   ;;  %v2017_v30 = vld [vmem:[%s3277_s11 + $0x70] sm:$0xff] (%p3085_p6)  }
 0x145   : > { %2616 = vst.msk [vmem:[%s3277_s11 + $0xd0] sm:$0xf] %vm734_vm1, %v2718_v61  ;;  %2650 = vst.msk [vmem:[%s3277_s11 + $0xf8] sm:$0xf] %vm734_vm1, %v2728_v0  ;;  %v2719_v48 = vpack.c.bf16 %v1613_v2, %v1613_v2  ;;  %v1670_v23 = vmax.f32 %v1515_v10, %v1613_v2  ;;  %v1776_v31 = vadd.f32 %v2857_v39, %v3248_v1  ;;  %v2021_v12 = vld [vmem:[%s3277_s11 + $0x78] sm:$0xff] (%p3085_p6)   ;;  %v2025_v38 = vld [vmem:[%s3277_s11 + $0x80] sm:$0xff] (%p3085_p6)  }
 0x146   : > { %v1768_v41 = vadd.f32 %v3248_v1, %v1767_v54  ;;  %1858 = vrot.lane.b32.xlu1 %v2733_v56, %s3006_s13  ;;  %2619 = vst.msk [vmem:[%s3277_s11 + $0xdc] sm:$0xf] %vm734_vm1, %v2721_v24  ;;  %v2726_v42 = vpack.c.bf16 %v1765_v57, %v1765_v57  ;;  %v1824_v34 = vmax.f32 %v1669_v35, %v1765_v57  ;;  %v2029_v55 = vld [vmem:[%s3277_s11 + $0x88] sm:$0xff] (%p3085_p6)   ;;  %v2037_v49 = vld [vmem:[%s3277_s11 + $0x98] sm:$0xff] (%p3085_p6)  }
 0x147   : > { %1852 = vrot.lane.b32.xlu0 %v2730_v44, %s3006_s13  ;;  %2617 = vst.msk [vmem:[%s3277_s11 + $0xd4] sm:$0xf] %vm734_vm1, %v2719_v48  ;;  %v2729_v9 = vpack.c.bf16 %v1776_v31, %v1776_v31  ;;  %v1827_v59 = vmax.f32 %v1672_v47, %v1776_v31  ;;  %v2731_v1 = vpack.c.bf16 %v1821_v36, %v1821_v36  ;;  %v1997_v36 = vld [vmem:[%s3277_s11 + $0x48] sm:$0xff] (%p3085_p6)   ;;  %v2041_v52 = vld [vmem:[%s3277_s11 + $0xa0] sm:$0xff] (%p3085_p6)  }
 0x148   : > { %v2727_v53 = vpack.c.bf16 %v1768_v41, %v1768_v41  ;;  %v1825_v63 = vmax.f32 %v1670_v23, %v1768_v41  ;;  %2648 = vst.msk [vmem:[%s3277_s11 + $0xf0] sm:$0xf] %vm734_vm1, %v2726_v42  ;;  %v2736_v10 = vpack.c.bf16 %v1826_v58, %v1826_v58  ;;  %v2734_v15 = vpack.c.bf16 %v1824_v34, %v1824_v34  ;;  %v2045_v46 = vld [vmem:[%s3277_s11 + $0xa8] sm:$0xff] (%p3085_p6)   ;;  %v2049_v60 = vld [vmem:[%s3277_s11 + $0xb0] sm:$0xff] (%p3085_p6)   ;;  %v2053_v39 = vld [vmem:[%s3277_s11 + $0xb8] sm:$0xff] (%p3085_p6)  }
 0x149   : > { %2651 = vst.msk [vmem:[%s3277_s11 + $0xfc] sm:$0xf] %vm734_vm1, %v2729_v9  ;;  %v2737_v40 = vpack.c.bf16 %v1827_v59, %v1827_v59  ;;  %v2057_v61 = vld [vmem:[%s3277_s11 + $0xc0] sm:$0xff] (%p3085_p6)   ;;  %v2061_v35 = vld [vmem:[%s3277_s11 + $0xc8] sm:$0xff] (%p3085_p6)  }
 0x14a   : > { %2649 = vst.msk [vmem:[%s3277_s11 + $0xf4] sm:$0xf] %vm734_vm1, %v2727_v53  ;;  %1890 = vrot.lane.b32.xlu1 %v2733_v56, %s3005_s12  ;;  %v2735_v4 = vpack.c.bf16 %v1825_v63, %v1825_v63  ;;  %v2033_v56 = vld [vmem:[%s3277_s11 + $0x90] sm:$0xff] (%p3085_p6)   ;;  %v2073_v54 = vld [vmem:[%s3277_s11 + $0xe0] sm:$0xff] (%p3085_p6)  }
 0x14b   : > { %1884 = vrot.lane.b32.xlu0 %v2730_v44, %s3005_s12  ;;  %v2013_v44 = vld [vmem:[%s3277_s11 + $0x68] sm:$0xff] (%p3085_p6)  }
 0x14c   : > { %v2077_v24 = vld [vmem:[%s3277_s11 + $0xe8] sm:$0xff] (%p3085_p6)  }
 0x14d   : > { %v2069_v2 = vld [vmem:[%s3277_s11 + $0xd8] sm:$0xff] (%p3085_p6)  }
 0x14e   : > { %1886 = vrot.lane.b32.xlu1 %v2731_v1, %s3005_s12  ;;  %v2065_v0 = vld [vmem:[%s3277_s11 + $0xd0] sm:$0xff] (%p3085_p6)  }
 0x14f   : > { %1854 = vrot.lane.b32.xlu0 %v2731_v1, %s3006_s13 }
 0x150   : > { %v2085_v58 = vld [vmem:[%s3277_s11 + $0xf8] sm:$0xff] (%p3085_p6)  }
 0x151   : > { %v2081_v47 = vld [vmem:[%s3277_s11 + $0xf0] sm:$0xff] (%p3085_p6)  }
 0x152   : > { %1866 = vrot.lane.b32.xlu1 %v2737_v40, %s3006_s13 }
 0x153   : > { %1864 = vrot.lane.b32.xlu0 %v2736_v10, %s3006_s13 }
 0x156   : > { %1862 = vrot.lane.b32.xlu1 %v2735_v4, %s3006_s13 }
 0x157   : > { %1860 = vrot.lane.b32.xlu0 %v2734_v15, %s3006_s13 }
 0x15a   : > { %1894 = vrot.lane.b32.xlu1 %v2735_v4, %s3005_s12 }
 0x15b   : > { %1892 = vrot.lane.b32.xlu0 %v2734_v15, %s3005_s12 }
 0x15e   : > { %1898 = vrot.lane.b32.xlu1 %v2737_v40, %s3005_s12 }
 0x15f   : > { %1896 = vrot.lane.b32.xlu0 %v2736_v10, %s3005_s12  ;;  %s2663_s12 = sshll.u32 (%p3085_p6), %s1943_s29, 2 }
 0x160   : > { %s3796_s16 = scalar_lea.vmem (%p3085_p6), %s3877_s3, %s2663_s12 }
 0x161   : > { %1962 = vst [vmem:[%s3796_s16] sm:$0xff] (%p3085_p6), %v1961_v62   ;;  %1966 = vst [vmem:[%s3796_s16 + $0x8] sm:$0xff] (%p3085_p6), %v1965_v3  }
 0x162   : > { %1970 = vst [vmem:[%s3796_s16 + $0x10] sm:$0xff] (%p3085_p6), %v1969_v26   ;;  %1974 = vst [vmem:[%s3796_s16 + $0x18] sm:$0xff] (%p3085_p6), %v1973_v29  }
 0x163   : > { %1978 = vst [vmem:[%s3796_s16 + $0x40] sm:$0xff] (%p3085_p6), %v1977_v5   ;;  %1982 = vst [vmem:[%s3796_s16 + $0x48] sm:$0xff] (%p3085_p6), %v1981_v8  }
 0x164   : > { %1986 = vst [vmem:[%s3796_s16 + $0x50] sm:$0xff] (%p3085_p6), %v1985_v6   ;;  %1990 = vst [vmem:[%s3796_s16 + $0x58] sm:$0xff] (%p3085_p6), %v1989_v37  }
 0x165   : > { %1994 = vst [vmem:[%s3796_s16 + $0x80] sm:$0xff] (%p3085_p6), %v1993_v25   ;;  %1998 = vst [vmem:[%s3796_s16 + $0x88] sm:$0xff] (%p3085_p6), %v1997_v36  }
 0x166   : > { %2002 = vst [vmem:[%s3796_s16 + $0x90] sm:$0xff] (%p3085_p6), %v2001_v43   ;;  %2006 = vst [vmem:[%s3796_s16 + $0x98] sm:$0xff] (%p3085_p6), %v2005_v45  }
 0x167   : > { %2010 = vst [vmem:[%s3796_s16 + $0xc0] sm:$0xff] (%p3085_p6), %v2009_v50   ;;  %2014 = vst [vmem:[%s3796_s16 + $0xc8] sm:$0xff] (%p3085_p6), %v2013_v44  }
 0x168   : > { %2018 = vst [vmem:[%s3796_s16 + $0xd0] sm:$0xff] (%p3085_p6), %v2017_v30   ;;  %2022 = vst [vmem:[%s3796_s16 + $0xd8] sm:$0xff] (%p3085_p6), %v2021_v12  }
 0x169   : > { %2026 = vst [vmem:[%s3796_s16 + $0x100] sm:$0xff] (%p3085_p6), %v2025_v38   ;;  %2030 = vst [vmem:[%s3796_s16 + $0x108] sm:$0xff] (%p3085_p6), %v2029_v55  }
 0x16a   : > { %2034 = vst [vmem:[%s3796_s16 + $0x110] sm:$0xff] (%p3085_p6), %v2033_v56   ;;  %2038 = vst [vmem:[%s3796_s16 + $0x118] sm:$0xff] (%p3085_p6), %v2037_v49  }
 0x16b   : > { %2042 = vst [vmem:[%s3796_s16 + $0x140] sm:$0xff] (%p3085_p6), %v2041_v52   ;;  %2046 = vst [vmem:[%s3796_s16 + $0x148] sm:$0xff] (%p3085_p6), %v2045_v46  }
 0x16c   : > { %2050 = vst [vmem:[%s3796_s16 + $0x150] sm:$0xff] (%p3085_p6), %v2049_v60   ;;  %2054 = vst [vmem:[%s3796_s16 + $0x158] sm:$0xff] (%p3085_p6), %v2053_v39  }
 0x16d   : > { %2058 = vst [vmem:[%s3796_s16 + $0x180] sm:$0xff] (%p3085_p6), %v2057_v61   ;;  %2062 = vst [vmem:[%s3796_s16 + $0x188] sm:$0xff] (%p3085_p6), %v2061_v35  }
 0x16e   : > { %2066 = vst [vmem:[%s3796_s16 + $0x190] sm:$0xff] (%p3085_p6), %v2065_v0   ;;  %2070 = vst [vmem:[%s3796_s16 + $0x198] sm:$0xff] (%p3085_p6), %v2069_v2  }
 0x16f   : > { %2074 = vst [vmem:[%s3796_s16 + $0x1c0] sm:$0xff] (%p3085_p6), %v2073_v54   ;;  %2078 = vst [vmem:[%s3796_s16 + $0x1c8] sm:$0xff] (%p3085_p6), %v2077_v24  }
 0x170   : > { %2082 = vst [vmem:[%s3796_s16 + $0x1d0] sm:$0xff] (%p3085_p6), %v2081_v47   ;;  %2086 = vst [vmem:[%s3796_s16 + $0x1d8] sm:$0xff] (%p3085_p6), %v2085_v58  }
 0x1b4   : > { %v1889_v16 = vpop.permute.xlu0 %1888  ;;  %v1857_v19 = vpop.permute.xlu1 %1856 }
 0x1b5   : > { %1910 = vst.msk [vmem:[%s3751_s7 + $0x8] sm:$0xf] %vm734_vm1, %v1889_v16  ;;  %1878 = vst.msk [vmem:[%s568_s20 + $0x8] sm:$0xf] %vm734_vm1, %v1857_v19 }
 0x1b8   : > { %v1859_v20 = vpop.permute.xlu1 %1858 }
 0x1b9   : > { %1879 = vst.msk [vmem:[%s568_s20 + $0xc] sm:$0xf] %vm734_vm1, %v1859_v20  ;;  %v1853_v21 = vpop.permute.xlu0 %1852 }
 0x1ba   : > { %1876 = vst.msk [vmem:[%s568_s20] sm:$0xf] %vm734_vm1, %v1853_v21 }
 0x1bc   : > { %v1891_v17 = vpop.permute.xlu1 %1890 }
 0x1bd   : > { %1911 = vst.msk [vmem:[%s3751_s7 + $0xc] sm:$0xf] %vm734_vm1, %v1891_v17  ;;  %v1885_v18 = vpop.permute.xlu0 %1884 }
 0x1be   : > { %1908 = vst.msk [vmem:[%s3751_s7] sm:$0xf] %vm734_vm1, %v1885_v18 }
 0x1c0   : > { %v1887_v27 = vpop.permute.xlu1 %1886 }
 0x1c1   : > { %1909 = vst.msk [vmem:[%s3751_s7 + $0x4] sm:$0xf] %vm734_vm1, %v1887_v27  ;;  %v1855_v11 = vpop.permute.xlu0 %1854 }
 0x1c2   : > { %1877 = vst.msk [vmem:[%s568_s20 + $0x4] sm:$0xf] %vm734_vm1, %v1855_v11 }
 0x1c4   : > { %v1867_v28 = vpop.permute.xlu1 %1866 }
 0x1c5   : > { %1883 = vst.msk [vmem:[%s568_s20 + $0x1c] sm:$0xf] %vm734_vm1, %v1867_v28  ;;  %v1865_v7 = vpop.permute.xlu0 %1864 }
 0x1c6   : > { %1882 = vst.msk [vmem:[%s568_s20 + $0x18] sm:$0xf] %vm734_vm1, %v1865_v7 }
 0x1c8   : > { %v1863_v51 = vpop.permute.xlu1 %1862 }
 0x1c9   : > { %1881 = vst.msk [vmem:[%s568_s20 + $0x14] sm:$0xf] %vm734_vm1, %v1863_v51  ;;  %v1861_v13 = vpop.permute.xlu0 %1860 }
 0x1ca   : > { %1880 = vst.msk [vmem:[%s568_s20 + $0x10] sm:$0xf] %vm734_vm1, %v1861_v13 }
 0x1cc   : > { %v1895_v22 = vpop.permute.xlu1 %1894  ;;  %1940 = sbr.rel (!%p3085_p6) target bundleno = 467 (0x1d3), region = 77 }
 0x1cd   : > { %1913 = vst.msk [vmem:[%s3751_s7 + $0x14] sm:$0xf] %vm734_vm1, %v1895_v22  ;;  %v1893_v32 = vpop.permute.xlu0 %1892 }
 0x1ce   : > { %1912 = vst.msk [vmem:[%s3751_s7 + $0x10] sm:$0xf] %vm734_vm1, %v1893_v32 }
 0x1d0   : > { %v1899_v33 = vpop.permute.xlu1 %1898 }
 0x1d1   : > { %1915 = vst.msk [vmem:[%s3751_s7 + $0x1c] sm:$0xf] %vm734_vm1, %v1899_v33  ;;  %v1897_v14 = vpop.permute.xlu0 %1896 }
 0x1d2   : > { %1914 = vst.msk [vmem:[%s3751_s7 + $0x18] sm:$0xf] %vm734_vm1, %v1897_v14 }
 0x1d3 PF: > { %s16_s24 = sadd.s32 1, %s3003_s24   ;;  %s3881_s18 = smov %s2983_s19 }
 0x1d4   : > { %p13_p0 = scmp.ge.s32.totalorder %s16_s24, 6   ;;  %s3882_s19 = smov %s3093_s8 }
 0x1d5   : > { %s3883_s20 = smov %s2995_s22  ;;  %s3884_s21 = smov %s2999_s23 }
 0x1d6   : > { %s3885_s22 = smov %s3888_s25  ;;  %s3886_s23 = smov %s3892_s26 }
 0x1d7   :  { %15 = sbr.rel (!%p13_p0) target bundleno = 4 (0x4), region = 187 }

</bundles_post_ra>
